<compile_context>
chip_gen: v5e
topology: v5e:2x2
jax: 0.10.0
libtpu: 0.0.40
codegen_flags: <defaults>
</compile_context>

<pallas_src>
import functools

import jax
import jax.numpy as jnp
from jax.experimental import pallas as pl
from jax.experimental.pallas import tpu as pltpu


def _round_up(x, m):
    return ((x + m - 1) // m) * m


# ----------------------------------------------------------------------------
# Pair kernel: on/off-diagonal sums of c = std(A)^T std(B) / batch_size
# ----------------------------------------------------------------------------
def _pair_kernel(a_ref, b_ref, on_ref, off_ref,
                 acc_ref, diag_ref, sa_ref, sqa_ref, sb_ref, sqb_ref, *,
                 batch_size, tile_b, standardize, mask_rows, eps):
    phase = pl.program_id(0)
    step = pl.program_id(1)
    nsteps = pl.num_programs(1)

    acc_phase = 1 if standardize else 0
    in_acc_phase = phase == acc_phase
    n = jnp.float32(batch_size)

    if standardize:
        in_stats_phase = phase == 0

        @pl.when(jnp.logical_and(in_stats_phase, step == 0))
        def _init_stats():
            sa_ref[...] = jnp.zeros_like(sa_ref)
            sqa_ref[...] = jnp.zeros_like(sqa_ref)
            sb_ref[...] = jnp.zeros_like(sb_ref)
            sqb_ref[...] = jnp.zeros_like(sqb_ref)

        @pl.when(in_stats_phase)
        def _accum_stats():
            a = a_ref[...].astype(jnp.float32)
            b = b_ref[...].astype(jnp.float32)
            # zero-padded batch rows contribute 0 to every sum -> stats use
            # the true batch_size below.
            sa_ref[...] += jnp.sum(a, axis=0, keepdims=True)
            sqa_ref[...] += jnp.sum(a * a, axis=0, keepdims=True)
            sb_ref[...] += jnp.sum(b, axis=0, keepdims=True)
            sqb_ref[...] += jnp.sum(b * b, axis=0, keepdims=True)

    @pl.when(jnp.logical_and(in_acc_phase, step == 0))
    def _init_acc():
        acc_ref[...] = jnp.zeros_like(acc_ref)
        diag_ref[...] = jnp.zeros_like(diag_ref)

    @pl.when(in_acc_phase)
    def _accumulate():
        a = a_ref[...].astype(jnp.float32)
        b = b_ref[...].astype(jnp.float32)
        if standardize:
            # torch.std defaults to ddof=1; eps is added to std (not var).
            ma = sa_ref[...] / n
            mb = sb_ref[...] / n
            var_a = jnp.maximum(sqa_ref[...] - n * ma * ma, 0.0) / (n - 1.0)
            var_b = jnp.maximum(sqb_ref[...] - n * mb * mb, 0.0) / (n - 1.0)
            inv_a = 1.0 / (jnp.sqrt(var_a) + eps)
            inv_b = 1.0 / (jnp.sqrt(var_b) + eps)
            a_s = (a - ma) * inv_a
            b_s = (b - mb) * inv_b
            if mask_rows:
                # zero-padded batch rows become -mean/(std+eps) after centering;
                # masking the anchor side alone zeroes their contribution to
                # both the matmul and the diagonal.
                row = jax.lax.broadcasted_iota(jnp.int32, (tile_b, 1), 0)
                valid = (row + step * tile_b) < batch_size
                a_s = jnp.where(valid, a_s, 0.0)
        else:
            a_s, b_s = a, b

        # A^T B via dim-0 contraction: MXU-native, no explicit transpose.
        acc_ref[...] += jax.lax.dot_general(
            a_s, b_s, (((0,), (0,)), ((), ())),
            preferred_element_type=jnp.float32)
        # diagonal of A_std^T B_std accumulated directly (no iota mask).
        diag_ref[...] += jnp.sum(a_s * b_s, axis=0, keepdims=True)

    @pl.when(jnp.logical_and(in_acc_phase, step == nsteps - 1))
    def _finalize():
        inv_n = 1.0 / n
        c = acc_ref[...] * inv_n
        diag = diag_ref[...] * inv_n
        on = jnp.sum((diag - 1.0) ** 2)
        off = jnp.sum(c * c) - jnp.sum(diag * diag)
        on_ref[...] = jnp.reshape(on, (1, 1))
        off_ref[...] = jnp.reshape(off, (1, 1))


def _barlow_pair(anchor, contrast, *, standardize, batch_tile=256, eps=1e-6):
    """Returns (on_diag_sum, off_diag_sum) for one ordered (anchor, contrast) pair."""
    B, D = anchor.shape
    D_pad = _round_up(D, 128)                               # lane-dense MXU tiles
    tb = min(_round_up(B, 8), _round_up(max(batch_tile, 8), 8))
    B_pad = _round_up(B, tb)
    nb = B_pad // tb
    num_phases = 2 if standardize else 1
    mask_rows = standardize and (B_pad != B)

    if (B_pad, D_pad) != (B, D):
        pad = ((0, B_pad - B), (0, D_pad - D))
        anchor = jnp.pad(anchor, pad)
        contrast = jnp.pad(contrast, pad)

    itemsize = jnp.dtype(anchor.dtype).itemsize
    kernel = functools.partial(
        _pair_kernel, batch_size=B, tile_b=tb, standardize=standardize,
        mask_rows=mask_rows, eps=eps)

    flops = 2 * B_pad * D_pad * D_pad + 8 * num_phases * B_pad * D_pad
    bytes_accessed = num_phases * 2 * B_pad * D_pad * itemsize + 8
    vmem_bytes = (4 * tb * D_pad * itemsize        # 2 inputs x double buffer
                  + D_pad * D_pad * 4              # (D, D) accumulator
                  + 5 * 8 * D_pad * 4              # row-vector scratch
                  + (2 << 20))                     # headroom

    on, off = pl.pallas_call(
        kernel,
        grid=(num_phases, nb),
        out_shape=(jax.ShapeDtypeStruct((1, 1), jnp.float32),
                   jax.ShapeDtypeStruct((1, 1), jnp.float32)),
        in_specs=[pl.BlockSpec((tb, D_pad), lambda ph, i: (i, 0)),
                  pl.BlockSpec((tb, D_pad), lambda ph, i: (i, 0))],
        out_specs=(pl.BlockSpec((1, 1), lambda ph, i: (0, 0)),
                   pl.BlockSpec((1, 1), lambda ph, i: (0, 0))),
        scratch_shapes=[
            pltpu.VMEM((D_pad, D_pad), jnp.float32),   # acc: A_std^T B_std
            pltpu.VMEM((1, D_pad), jnp.float32),       # diag accumulator
            pltpu.VMEM((1, D_pad), jnp.float32),       # sum_a
            pltpu.VMEM((1, D_pad), jnp.float32),       # sumsq_a
            pltpu.VMEM((1, D_pad), jnp.float32),       # sum_b
            pltpu.VMEM((1, D_pad), jnp.float32),       # sumsq_b
        ],
        compiler_params=pltpu.CompilerParams(
            dimension_semantics=("arbitrary", "arbitrary"),
            vmem_limit_bytes=int(min(max(vmem_bytes, 32 * 1024 * 1024),
                                     120 * 1024 * 1024))),
        cost_estimate=pl.CostEstimate(flops=int(flops),
                                      transcendentals=int(2 * D_pad * nb),
                                      bytes_accessed=int(bytes_accessed)),
    )(anchor, contrast)

    on = on[0, 0]
    off = off[0, 0]
    if D_pad != D:
        # each zero-padded feature column contributes exactly (0 - 1)^2 = 1 to on
        on = on - jnp.float32(D_pad - D)
    return on, off


# ----------------------------------------------------------------------------
# Standardization kernel (only needed for the rare n_views > 2 path, where the
# PyTorch loop cumulatively re-standardizes the anchor loop variable).
# ----------------------------------------------------------------------------
def _standardize_kernel(x_ref, o_ref, *, batch_size, eps):
    x = x_ref[...].astype(jnp.float32)
    m = jnp.mean(x, axis=0, keepdims=True)
    d = x - m
    var = jnp.sum(d * d, axis=0, keepdims=True) / (batch_size - 1)
    o_ref[...] = d / (jnp.sqrt(var) + eps)


def _standardize_view(x, eps=1e-6):
    # TODO(synk): loads the full (B, D) view as one block; tile if B*D is VMEM-sized.
    B, D = x.shape
    return pl.pallas_call(
        functools.partial(_standardize_kernel, batch_size=B, eps=eps),
        out_shape=jax.ShapeDtypeStruct((B, D), jnp.float32),
    )(x)


# ----------------------------------------------------------------------------
# Forward of BarlowTwinsLoss (labels=None, mask=None, adv=False)
# ----------------------------------------------------------------------------
def barlow_twins_loss(features, projection_dim, lmda=0.051, standardize=True,
                      batch_tile=256):
    """BarlowTwinsLoss.forward with labels=None, mask=None, adv=False.

    Note: in the PyTorch module the non-adversarial path hard-codes the
    off-diagonal weight to 0.0051 (`lmda` is only used when adv=True), and the
    eye mask it builds is never consumed — both faithfully reproduced here.
    `batch_tile` ~256 fits v7x's VMEM; v5e/v6e can use 512-1024.
    """
    if features.ndim < 3:
        raise ValueError('`features` needs to be [bsz, n_views, ...], '
                         'at least 3 dimensions are required')
    B, V = features.shape[0], features.shape[1]
    feats = features.reshape(B, V, -1)
    if not jnp.issubdtype(feats.dtype, jnp.floating):
        feats = feats.astype(jnp.float32)
    penalty = projection_dim / 128.0

    def _scale_and_weight(on, off):
        if projection_dim != 128:
            on = on / penalty
            off = off / (penalty * (penalty - 1.0))
        return on + 0.0051 * off

    views = [feats[:, i, :] for i in range(V)]

    if V == 2:
        # c(1,0) == c(0,1)^T, so both ordered pairs give identical on/off sums:
        # compute the pair once and count it twice (halves the kernel work).
        on, off = _barlow_pair(views[0], views[1], standardize=standardize,
                               batch_tile=batch_tile)
        total = 2.0 * _scale_and_weight(on, off)
    else:
        # Faithful replication of the PyTorch double loop, including the
        # cumulative re-standardization of the anchor loop variable
        # (which prevents standardizing each view just once).
        total = jnp.float32(0.0)
        for p in range(V):
            anchor = views[p]
            for q in range(V):
                contrast = views[q]
                if p != q:
                    if standardize:
                        anchor = _standardize_view(anchor)
                        contrast = _standardize_view(contrast)
                    on, off = _barlow_pair(anchor, contrast,
                                           standardize=False,
                                           batch_tile=batch_tile)
                    total = total + _scale_and_weight(on, off)
    return total / float(V ** 2)


# ----------------------------------------------------------------------------
# Pure-JAX reference replicating the PyTorch forward (non-adv path)
# ----------------------------------------------------------------------------
def _reference_loss(features, projection_dim, standardize=True):
    B, V = features.shape[0], features.shape[1]
    feats = features.reshape(B, V, -1).astype(jnp.float32)
    penalty = projection_dim / 128.0
    views = [feats[:, i, :] for i in range(V)]
    total = jnp.float32(0.0)
    for p in range(V):
        a = views[p]
        for q in range(V):
            b = views[q]
            if p != q:
                if standardize:
                    a = (a - a.mean(0)) / (a.std(0, ddof=1) + 1e-6)
                    b = (b - b.mean(0)) / (b.std(0, ddof=1) + 1e-6)
                c = (a.T @ b) / B
                diag = jnp.diag(c)
                on = jnp.sum((diag - 1.0) ** 2)
                off = jnp.sum(c * c) - jnp.sum(diag * diag)
                if projection_dim != 128:
                    on = on / penalty
                    off = off / (penalty * (penalty - 1.0))
                total = total + on + 0.0051 * off
    return total / float(V ** 2)


if __name__ == "__main__":
    # f32-accurate matmuls in the pure-JAX reference (the kernel accumulates in f32).
    jax.config.update("jax_default_matmul_precision", "highest")

    key = jax.random.PRNGKey(0)
    k1, k2 = jax.random.split(key)

    # Case 1: standard 2-view Barlow Twins. Shapes chosen so the kernel
    # exercises batch tiling (nb=3), feature padding (96 -> 128, on-diag
    # correction) and padded-row masking (B=20 -> B_pad=24).
    B, V, D = 20, 2, 96
    feats = jax.random.normal(k1, (B, V, D), dtype=jnp.float32) + 0.5
    loss = jax.block_until_ready(
        barlow_twins_loss(feats, projection_dim=D, batch_tile=8))
    ref = jax.block_until_ready(_reference_loss(feats, projection_dim=D))
    assert jnp.allclose(loss, ref, rtol=1e-4, atol=1e-3), (loss, ref)

    # Case 2: standardize=False (single-phase grid).
    loss_ns = jax.block_until_ready(
        barlow_twins_loss(feats, projection_dim=D, standardize=False,
                          batch_tile=8))
    ref_ns = jax.block_until_ready(
        _reference_loss(feats, projection_dim=D, standardize=False))
    assert jnp.allclose(loss_ns, ref_ns, rtol=1e-4, atol=1e-3), (loss_ns, ref_ns)

    # Case 3: n_views > 2 (cumulative anchor re-standardization path).
    B3, V3, D3 = 12, 3, 64
    feats3 = jax.random.normal(k2, (B3, V3, D3), dtype=jnp.float32) * 1.5 + 0.25
    loss3 = jax.block_until_ready(
        barlow_twins_loss(feats3, projection_dim=D3, batch_tile=8))
    ref3 = jax.block_until_ready(_reference_loss(feats3, projection_dim=D3))
    assert jnp.allclose(loss3, ref3, rtol=1e-4, atol=1e-3), (loss3, ref3)

    print("KERNEL_OK")
</pallas_src>

<mosaic_0001>
module attributes {stable_mosaic.version = 11 : i64} {
  func.func @_pair_kernel(%arg0: i32, %arg1: i32, %arg2: memref<8x128xf32, #tpu.memory_space<vmem>>, %arg3: memref<8x128xf32, #tpu.memory_space<vmem>>, %arg4: memref<1x1xf32, #tpu.memory_space<vmem>>, %arg5: memref<1x1xf32, #tpu.memory_space<vmem>>, %arg6: memref<128x128xf32, #tpu.memory_space<vmem>>, %arg7: memref<1x128xf32, #tpu.memory_space<vmem>>, %arg8: memref<1x128xf32, #tpu.memory_space<vmem>>, %arg9: memref<1x128xf32, #tpu.memory_space<vmem>>, %arg10: memref<1x128xf32, #tpu.memory_space<vmem>>, %arg11: memref<1x128xf32, #tpu.memory_space<vmem>>) attributes {dimension_semantics = [#tpu.dimension_semantics<arbitrary>, #tpu.dimension_semantics<arbitrary>], iteration_bounds = array<i64: 2, 3>, scalar_prefetch = 0 : i64, scratch_operands = 6 : i64, tpu.core_type = #tpu.core_type<tc>, window_params = [{transform_indices = @transform_0, window_bounds = array<i64: 8, 128>}, {transform_indices = @transform_1, window_bounds = array<i64: 8, 128>}, {pipeline_mode = #tpu.pipeline_mode<synchronous>, transform_indices = @transform_2, window_bounds = array<i64: 1, 1>}, {pipeline_mode = #tpu.pipeline_mode<synchronous>, transform_indices = @transform_3, window_bounds = array<i64: 1, 1>}]} {
    %c1_i32 = arith.constant 1 : i32
    %0 = arith.cmpi eq, %arg0, %c1_i32 : i32
    %c0_i32 = arith.constant 0 : i32
    %1 = arith.cmpi eq, %arg0, %c0_i32 : i32
    %c0_i32_0 = arith.constant 0 : i32
    %2 = arith.cmpi eq, %arg1, %c0_i32_0 : i32
    %3 = arith.andi %1, %2 : i1
    %4 = arith.extui %3 : i1 to i32
    %c0_i32_1 = arith.constant 0 : i32
    %5 = arith.cmpi ne, %4, %c0_i32_1 : i32
    scf.if %5 {
      %cst_8 = arith.constant 0.000000e+00 : f32
      %18 = vector.broadcast %cst_8 : f32 to vector<1x128xf32>
      %c0 = arith.constant 0 : index
      %c0_9 = arith.constant 0 : index
      %19 = vector.load %arg8[%c0, %c0_9] : memref<1x128xf32, #tpu.memory_space<vmem>>, vector<1x128xf32>
      tpu.vector_store %arg8[%c0, %c0_9], %18 {strides = array<i32>} : memref<1x128xf32, #tpu.memory_space<vmem>>, vector<1x128xf32>,
      %cst_10 = arith.constant 0.000000e+00 : f32
      %20 = vector.broadcast %cst_10 : f32 to vector<1x128xf32>
      %c0_11 = arith.constant 0 : index
      %c0_12 = arith.constant 0 : index
      %21 = vector.load %arg9[%c0_11, %c0_12] : memref<1x128xf32, #tpu.memory_space<vmem>>, vector<1x128xf32>
      tpu.vector_store %arg9[%c0_11, %c0_12], %20 {strides = array<i32>} : memref<1x128xf32, #tpu.memory_space<vmem>>, vector<1x128xf32>,
      %cst_13 = arith.constant 0.000000e+00 : f32
      %22 = vector.broadcast %cst_13 : f32 to vector<1x128xf32>
      %c0_14 = arith.constant 0 : index
      %c0_15 = arith.constant 0 : index
      %23 = vector.load %arg10[%c0_14, %c0_15] : memref<1x128xf32, #tpu.memory_space<vmem>>, vector<1x128xf32>
      tpu.vector_store %arg10[%c0_14, %c0_15], %22 {strides = array<i32>} : memref<1x128xf32, #tpu.memory_space<vmem>>, vector<1x128xf32>,
      %cst_16 = arith.constant 0.000000e+00 : f32
      %24 = vector.broadcast %cst_16 : f32 to vector<1x128xf32>
      %c0_17 = arith.constant 0 : index
      %c0_18 = arith.constant 0 : index
      %25 = vector.load %arg11[%c0_17, %c0_18] : memref<1x128xf32, #tpu.memory_space<vmem>>, vector<1x128xf32>
      tpu.vector_store %arg11[%c0_17, %c0_18], %24 {strides = array<i32>} : memref<1x128xf32, #tpu.memory_space<vmem>>, vector<1x128xf32>,
    } else {
    }
    %6 = arith.extui %1 : i1 to i32
    %c0_i32_2 = arith.constant 0 : i32
    %7 = arith.cmpi ne, %6, %c0_i32_2 : i32
    scf.if %7 {
      %c0 = arith.constant 0 : index
      %c0_8 = arith.constant 0 : index
      %18 = vector.load %arg2[%c0, %c0_8] : memref<8x128xf32, #tpu.memory_space<vmem>>, vector<8x128xf32>
      %c0_9 = arith.constant 0 : index
      %c0_10 = arith.constant 0 : index
      %19 = vector.load %arg3[%c0_9, %c0_10] : memref<8x128xf32, #tpu.memory_space<vmem>>, vector<8x128xf32>
      %c0_11 = arith.constant 0 : index
      %c0_12 = arith.constant 0 : index
      %20 = vector.load %arg8[%c0_11, %c0_12] : memref<1x128xf32, #tpu.memory_space<vmem>>, vector<1x128xf32>
      %cst_13 = arith.constant dense<0.000000e+00> : vector<128xf32>
      %21 = vector.multi_reduction <add>, %18, %cst_13 [0] : vector<8x128xf32> to vector<128xf32>
      %22 = vector.shape_cast %21 : vector<128xf32> to vector<1x128xf32>
      %23 = arith.addf %20, %22 : vector<1x128xf32>
      %c0_14 = arith.constant 0 : index
      %c0_15 = arith.constant 0 : index
      %24 = vector.load %arg8[%c0_14, %c0_15] : memref<1x128xf32, #tpu.memory_space<vmem>>, vector<1x128xf32>
      tpu.vector_store %arg8[%c0_14, %c0_15], %23 {strides = array<i32>} : memref<1x128xf32, #tpu.memory_space<vmem>>, vector<1x128xf32>,
      %c0_16 = arith.constant 0 : index
      %c0_17 = arith.constant 0 : index
      %25 = vector.load %arg9[%c0_16, %c0_17] : memref<1x128xf32, #tpu.memory_space<vmem>>, vector<1x128xf32>
      %26 = arith.mulf %18, %18 : vector<8x128xf32>
      %cst_18 = arith.constant dense<0.000000e+00> : vector<128xf32>
      %27 = vector.multi_reduction <add>, %26, %cst_18 [0] : vector<8x128xf32> to vector<128xf32>
      %28 = vector.shape_cast %27 : vector<128xf32> to vector<1x128xf32>
      %29 = arith.addf %25, %28 : vector<1x128xf32>
      %c0_19 = arith.constant 0 : index
      %c0_20 = arith.constant 0 : index
      %30 = vector.load %arg9[%c0_19, %c0_20] : memref<1x128xf32, #tpu.memory_space<vmem>>, vector<1x128xf32>
      tpu.vector_store %arg9[%c0_19, %c0_20], %29 {strides = array<i32>} : memref<1x128xf32, #tpu.memory_space<vmem>>, vector<1x128xf32>,
      %c0_21 = arith.constant 0 : index
      %c0_22 = arith.constant 0 : index
      %31 = vector.load %arg10[%c0_21, %c0_22] : memref<1x128xf32, #tpu.memory_space<vmem>>, vector<1x128xf32>
      %cst_23 = arith.constant dense<0.000000e+00> : vector<128xf32>
      %32 = vector.multi_reduction <add>, %19, %cst_23 [0] : vector<8x128xf32> to vector<128xf32>
      %33 = vector.shape_cast %32 : vector<128xf32> to vector<1x128xf32>
      %34 = arith.addf %31, %33 : vector<1x128xf32>
      %c0_24 = arith.constant 0 : index
      %c0_25 = arith.constant 0 : index
      %35 = vector.load %arg10[%c0_24, %c0_25] : memref<1x128xf32, #tpu.memory_space<vmem>>, vector<1x128xf32>
      tpu.vector_store %arg10[%c0_24, %c0_25], %34 {strides = array<i32>} : memref<1x128xf32, #tpu.memory_space<vmem>>, vector<1x128xf32>,
      %c0_26 = arith.constant 0 : index
      %c0_27 = arith.constant 0 : index
      %36 = vector.load %arg11[%c0_26, %c0_27] : memref<1x128xf32, #tpu.memory_space<vmem>>, vector<1x128xf32>
      %37 = arith.mulf %19, %19 : vector<8x128xf32>
      %cst_28 = arith.constant dense<0.000000e+00> : vector<128xf32>
      %38 = vector.multi_reduction <add>, %37, %cst_28 [0] : vector<8x128xf32> to vector<128xf32>
      %39 = vector.shape_cast %38 : vector<128xf32> to vector<1x128xf32>
      %40 = arith.addf %36, %39 : vector<1x128xf32>
      %c0_29 = arith.constant 0 : index
      %c0_30 = arith.constant 0 : index
      %41 = vector.load %arg11[%c0_29, %c0_30] : memref<1x128xf32, #tpu.memory_space<vmem>>, vector<1x128xf32>
      tpu.vector_store %arg11[%c0_29, %c0_30], %40 {strides = array<i32>} : memref<1x128xf32, #tpu.memory_space<vmem>>, vector<1x128xf32>,
    } else {
    }
    %c0_i32_3 = arith.constant 0 : i32
    %8 = arith.cmpi eq, %arg1, %c0_i32_3 : i32
    %9 = arith.andi %0, %8 : i1
    %10 = arith.extui %9 : i1 to i32
    %c0_i32_4 = arith.constant 0 : i32
    %11 = arith.cmpi ne, %10, %c0_i32_4 : i32
    scf.if %11 {
      %cst_8 = arith.constant 0.000000e+00 : f32
      %18 = vector.broadcast %cst_8 : f32 to vector<128x128xf32>
      %c0 = arith.constant 0 : index
      %c0_9 = arith.constant 0 : index
      %19 = vector.load %arg6[%c0, %c0_9] : memref<128x128xf32, #tpu.memory_space<vmem>>, vector<128x128xf32>
      tpu.vector_store %arg6[%c0, %c0_9], %18 {strides = array<i32>} : memref<128x128xf32, #tpu.memory_space<vmem>>, vector<128x128xf32>,
      %cst_10 = arith.constant 0.000000e+00 : f32
      %20 = vector.broadcast %cst_10 : f32 to vector<1x128xf32>
      %c0_11 = arith.constant 0 : index
      %c0_12 = arith.constant 0 : index
      %21 = vector.load %arg7[%c0_11, %c0_12] : memref<1x128xf32, #tpu.memory_space<vmem>>, vector<1x128xf32>
      tpu.vector_store %arg7[%c0_11, %c0_12], %20 {strides = array<i32>} : memref<1x128xf32, #tpu.memory_space<vmem>>, vector<1x128xf32>,
    } else {
    }
    %12 = arith.extui %0 : i1 to i32
    %cst = arith.constant 2.000000e+01 : f32
    %c0_i32_5 = arith.constant 0 : i32
    %13 = arith.cmpi ne, %12, %c0_i32_5 : i32
    scf.if %13 {
      %c0 = arith.constant 0 : index
      %c0_8 = arith.constant 0 : index
      %18 = vector.load %arg2[%c0, %c0_8] : memref<8x128xf32, #tpu.memory_space<vmem>>, vector<8x128xf32>
      %c0_9 = arith.constant 0 : index
      %c0_10 = arith.constant 0 : index
      %19 = vector.load %arg3[%c0_9, %c0_10] : memref<8x128xf32, #tpu.memory_space<vmem>>, vector<8x128xf32>
      %c0_11 = arith.constant 0 : index
      %c0_12 = arith.constant 0 : index
      %20 = vector.load %arg8[%c0_11, %c0_12] : memref<1x128xf32, #tpu.memory_space<vmem>>, vector<1x128xf32>
      %21 = vector.broadcast %cst : f32 to vector<1x128xf32>
      %22 = arith.divf %20, %21 : vector<1x128xf32>
      %c0_13 = arith.constant 0 : index
      %c0_14 = arith.constant 0 : index
      %23 = vector.load %arg10[%c0_13, %c0_14] : memref<1x128xf32, #tpu.memory_space<vmem>>, vector<1x128xf32>
      %24 = vector.broadcast %cst : f32 to vector<1x128xf32>
      %25 = arith.divf %23, %24 : vector<1x128xf32>
      %c0_15 = arith.constant 0 : index
      %c0_16 = arith.constant 0 : index
      %26 = vector.load %arg9[%c0_15, %c0_16] : memref<1x128xf32, #tpu.memory_space<vmem>>, vector<1x128xf32>
      %27 = vector.broadcast %cst : f32 to vector<1x128xf32>
      %28 = arith.mulf %27, %22 : vector<1x128xf32>
      %29 = arith.mulf %28, %22 : vector<1x128xf32>
      %30 = arith.subf %26, %29 : vector<1x128xf32>
      %cst_17 = arith.constant 0.000000e+00 : f32
      %31 = vector.broadcast %cst_17 : f32 to vector<1x128xf32>
      %32 = arith.maximumf %30, %31 : vector<1x128xf32>
      %cst_18 = arith.constant 1.000000e+00 : f32
      %33 = arith.subf %cst, %cst_18 : f32
      %34 = vector.broadcast %33 : f32 to vector<1x128xf32>
      %35 = arith.divf %32, %34 : vector<1x128xf32>
      %c0_19 = arith.constant 0 : index
      %c0_20 = arith.constant 0 : index
      %36 = vector.load %arg11[%c0_19, %c0_20] : memref<1x128xf32, #tpu.memory_space<vmem>>, vector<1x128xf32>
      %37 = vector.broadcast %cst : f32 to vector<1x128xf32>
      %38 = arith.mulf %37, %25 : vector<1x128xf32>
      %39 = arith.mulf %38, %25 : vector<1x128xf32>
      %40 = arith.subf %36, %39 : vector<1x128xf32>
      %cst_21 = arith.constant 0.000000e+00 : f32
      %41 = vector.broadcast %cst_21 : f32 to vector<1x128xf32>
      %42 = arith.maximumf %40, %41 : vector<1x128xf32>
      %cst_22 = arith.constant 1.000000e+00 : f32
      %43 = arith.subf %cst, %cst_22 : f32
      %44 = vector.broadcast %43 : f32 to vector<1x128xf32>
      %45 = arith.divf %42, %44 : vector<1x128xf32>
      %46 = math.sqrt %35 : vector<1x128xf32>
      %cst_23 = arith.constant 9.99999997E-7 : f32
      %47 = vector.broadcast %cst_23 : f32 to vector<1x128xf32>
      %48 = arith.addf %46, %47 : vector<1x128xf32>
      %cst_24 = arith.constant 1.000000e+00 : f32
      %49 = vector.broadcast %cst_24 : f32 to vector<1x128xf32>
      %50 = arith.divf %49, %48 : vector<1x128xf32>
      %51 = math.sqrt %45 : vector<1x128xf32>
      %cst_25 = arith.constant 9.99999997E-7 : f32
      %52 = vector.broadcast %cst_25 : f32 to vector<1x128xf32>
      %53 = arith.addf %51, %52 : vector<1x128xf32>
      %cst_26 = arith.constant 1.000000e+00 : f32
      %54 = vector.broadcast %cst_26 : f32 to vector<1x128xf32>
      %55 = arith.divf %54, %53 : vector<1x128xf32>
      %56 = vector.broadcast %22 : vector<1x128xf32> to vector<8x128xf32>
      %57 = arith.subf %18, %56 : vector<8x128xf32>
      %58 = vector.broadcast %50 : vector<1x128xf32> to vector<8x128xf32>
      %59 = arith.mulf %57, %58 : vector<8x128xf32>
      %60 = vector.broadcast %25 : vector<1x128xf32> to vector<8x128xf32>
      %61 = arith.subf %19, %60 : vector<8x128xf32>
      %62 = vector.broadcast %55 : vector<1x128xf32> to vector<8x128xf32>
      %63 = arith.mulf %61, %62 : vector<8x128xf32>
      %64 = tpu.iota {dimensions = array<i32: 0>} : vector<8x1xi32>
      %c8_i32 = arith.constant 8 : i32
      %65 = arith.muli %arg1, %c8_i32 : i32
      %66 = vector.broadcast %65 : i32 to vector<8x1xi32>
      %67 = arith.addi %64, %66 : vector<8x1xi32>
      %c20_i32 = arith.constant 20 : i32
      %68 = vector.broadcast %c20_i32 : i32 to vector<8x1xi32>
      %69 = arith.cmpi slt, %67, %68 : vector<8x1xi32>
      %cst_27 = arith.constant 0.000000e+00 : f32
      %70 = vector.shape_cast %69 : vector<8x1xi1> to vector<8x1xi1>
      %71 = vector.broadcast %70 : vector<8x1xi1> to vector<8x128xi1>
      %72 = vector.broadcast %cst_27 : f32 to vector<8x128xf32>
      %73 = arith.select %71, %59, %72 : vector<8x128xi1>, vector<8x128xf32>
      %c0_28 = arith.constant 0 : index
      %c0_29 = arith.constant 0 : index
      %74 = vector.load %arg6[%c0_28, %c0_29] : memref<128x128xf32, #tpu.memory_space<vmem>>, vector<128x128xf32>
      %cst_30 = arith.constant dense<0.000000e+00> : vector<128x128xf32>
      %75 = tpu.matmul %73, %63, %cst_30 {dimension_numbers = #tpu.dot_dimension_numbers<[0], [0], [1], [1], [0, 1, 1, 1], [], []>, precision = #tpu.contract_precision<fp32>} : vector<8x128xf32>, vector<8x128xf32>, vector<128x128xf32> -> vector<128x128xf32>
      %76 = arith.addf %74, %75 : vector<128x128xf32>
      %c0_31 = arith.constant 0 : index
      %c0_32 = arith.constant 0 : index
      %77 = vector.load %arg6[%c0_31, %c0_32] : memref<128x128xf32, #tpu.memory_space<vmem>>, vector<128x128xf32>
      tpu.vector_store %arg6[%c0_31, %c0_32], %76 {strides = array<i32>} : memref<128x128xf32, #tpu.memory_space<vmem>>, vector<128x128xf32>,
      %c0_33 = arith.constant 0 : index
      %c0_34 = arith.constant 0 : index
      %78 = vector.load %arg7[%c0_33, %c0_34] : memref<1x128xf32, #tpu.memory_space<vmem>>, vector<1x128xf32>
      %79 = arith.mulf %73, %63 : vector<8x128xf32>
      %cst_35 = arith.constant dense<0.000000e+00> : vector<128xf32>
      %80 = vector.multi_reduction <add>, %79, %cst_35 [0] : vector<8x128xf32> to vector<128xf32>
      %81 = vector.shape_cast %80 : vector<128xf32> to vector<1x128xf32>
      %82 = arith.addf %78, %81 : vector<1x128xf32>
      %c0_36 = arith.constant 0 : index
      %c0_37 = arith.constant 0 : index
      %83 = vector.load %arg7[%c0_36, %c0_37] : memref<1x128xf32, #tpu.memory_space<vmem>>, vector<1x128xf32>
      tpu.vector_store %arg7[%c0_36, %c0_37], %82 {strides = array<i32>} : memref<1x128xf32, #tpu.memory_space<vmem>>, vector<1x128xf32>,
    } else {
    }
    %c2_i32 = arith.constant 2 : i32
    %14 = arith.cmpi eq, %arg1, %c2_i32 : i32
    %15 = arith.andi %0, %14 : i1
    %16 = arith.extui %15 : i1 to i32
    %cst_6 = arith.constant 2.000000e+01 : f32
    %c0_i32_7 = arith.constant 0 : i32
    %17 = arith.cmpi ne, %16, %c0_i32_7 : i32
    scf.if %17 {
      %cst_8 = arith.constant 1.000000e+00 : f32
      %18 = arith.divf %cst_8, %cst_6 : f32
      %c0 = arith.constant 0 : index
      %c0_9 = arith.constant 0 : index
      %19 = vector.load %arg6[%c0, %c0_9] : memref<128x128xf32, #tpu.memory_space<vmem>>, vector<128x128xf32>
      %20 = vector.broadcast %18 : f32 to vector<128x128xf32>
      %21 = arith.mulf %19, %20 : vector<128x128xf32>
      %c0_10 = arith.constant 0 : index
      %c0_11 = arith.constant 0 : index
      %22 = vector.load %arg7[%c0_10, %c0_11] : memref<1x128xf32, #tpu.memory_space<vmem>>, vector<1x128xf32>
      %23 = vector.broadcast %18 : f32 to vector<1x128xf32>
      %24 = arith.mulf %22, %23 : vector<1x128xf32>
      %cst_12 = arith.constant 1.000000e+00 : f32
      %25 = vector.broadcast %cst_12 : f32 to vector<1x128xf32>
      %26 = arith.subf %24, %25 : vector<1x128xf32>
      %27 = arith.mulf %26, %26 : vector<1x128xf32>
      %28 = vector.shape_cast %27 : vector<1x128xf32> to vector<1x1x128xf32>
      %cst_13 = arith.constant dense<0.000000e+00> : vector<1xf32>
      %29 = vector.multi_reduction <add>, %28, %cst_13 [1, 2] : vector<1x1x128xf32> to vector<1xf32>
      %30 = vector.shape_cast %29 : vector<1xf32> to vector<1x1x1xf32>
      %31 = vector.extract %30[0, 0, 0] : f32 from vector<1x1x1xf32>
      %32 = arith.mulf %21, %21 : vector<128x128xf32>
      %33 = vector.shape_cast %32 : vector<128x128xf32> to vector<1x128x128xf32>
      %cst_14 = arith.constant dense<0.000000e+00> : vector<1xf32>
      %34 = vector.multi_reduction <add>, %33, %cst_14 [1, 2] : vector<1x128x128xf32> to vector<1xf32>
      %35 = vector.shape_cast %34 : vector<1xf32> to vector<1x1x1xf32>
      %36 = vector.extract %35[0, 0, 0] : f32 from vector<1x1x1xf32>
      %37 = arith.mulf %24, %24 : vector<1x128xf32>
      %38 = vector.shape_cast %37 : vector<1x128xf32> to vector<1x1x128xf32>
      %cst_15 = arith.constant dense<0.000000e+00> : vector<1xf32>
      %39 = vector.multi_reduction <add>, %38, %cst_15 [1, 2] : vector<1x1x128xf32> to vector<1xf32>
      %40 = vector.shape_cast %39 : vector<1xf32> to vector<1x1x1xf32>
      %41 = vector.extract %40[0, 0, 0] : f32 from vector<1x1x1xf32>
      %42 = arith.subf %36, %41 : f32
      %43 = vector.broadcast %31 : f32 to vector<1x1xf32>
      %c0_16 = arith.constant 0 : index
      %c0_17 = arith.constant 0 : index
      %44 = vector.load %arg4[%c0_16, %c0_17] : memref<1x1xf32, #tpu.memory_space<vmem>>, vector<1x1xf32>
      tpu.vector_store %arg4[%c0_16, %c0_17], %43 {strides = array<i32>} : memref<1x1xf32, #tpu.memory_space<vmem>>, vector<1x1xf32>,
      %45 = vector.broadcast %42 : f32 to vector<1x1xf32>
      %c0_18 = arith.constant 0 : index
      %c0_19 = arith.constant 0 : index
      %46 = vector.load %arg5[%c0_18, %c0_19] : memref<1x1xf32, #tpu.memory_space<vmem>>, vector<1x1xf32>
      tpu.vector_store %arg5[%c0_18, %c0_19], %45 {strides = array<i32>} : memref<1x1xf32, #tpu.memory_space<vmem>>, vector<1x1xf32>,
    } else {
    }
    return
  }
  func.func @transform_0(%arg0: i32, %arg1: i32) -> (i32, i32) {
    %c0_i32 = arith.constant 0 : i32
    %c0_i32_0 = arith.constant 0 : i32
    return %arg1, %c0_i32 : i32, i32
  }
  func.func @transform_1(%arg0: i32, %arg1: i32) -> (i32, i32) {
    %c0_i32 = arith.constant 0 : i32
    %c0_i32_0 = arith.constant 0 : i32
    return %arg1, %c0_i32 : i32, i32
  }
  func.func @transform_2(%arg0: i32, %arg1: i32) -> (i32, i32) {
    %c0_i32 = arith.constant 0 : i32
    %c0_i32_0 = arith.constant 0 : i32
    %c0_i32_1 = arith.constant 0 : i32
    return %c0_i32, %c0_i32_0 : i32, i32
  }
  func.func @transform_3(%arg0: i32, %arg1: i32) -> (i32, i32) {
    %c0_i32 = arith.constant 0 : i32
    %c0_i32_0 = arith.constant 0 : i32
    %c0_i32_1 = arith.constant 0 : i32
    return %c0_i32, %c0_i32_0 : i32, i32
  }
}

</mosaic_0001>

<bundles_post_ra>
// kernel: tpu_custom_call.1
= control target key start
LH: loop header
LB: loop body
LE: loop exit
PB: predicated region body
PF: predicated region fallthrough
CT: control target
= control target key end

     0   :  { %s2230_s0 = inlined_call_operand.hbm [shape: f32[24,128], index: 0, kind: input, shape index: {}]   ;;  %s2231_s1 = inlined_call_operand.hbm [shape: f32[24,128], index: 1, kind: input, shape index: {}]   ;;  %s2232_s2 = inlined_call_operand.hbm [shape: f32[1,1], index: 2, kind: output, shape index: {0}]   ;;  %s2233_s3 = inlined_call_operand.hbm [shape: f32[1,1], index: 3, kind: output, shape index: {1}]  }
   0x1   :  { %2235 = sst [smem:[#allocation20_spill]] %s2230_s0 }
   0x2   :  { %9 = vsyncpa [#allocation9], 0 }
   0x3   :  { %11 = vsyncpa [#allocation9 + $0x1], 0 }
   0x4   :  { %12 = vsyncpa [#allocation12], 0 }
   0x5   :  { %14 = vsyncpa [#allocation12 + $0x1], 0 }
   0x6   :  { %15 = vsyncpa [#allocation10], 0 }
   0x7   :  { %16 = vsyncpa [#allocation15], 0  ;;  %s1751_s12 = smov 0   ;;  %s1753_s13 = smov 0  }
   0x8   :  { %s1755_s14 = smov 0   ;;  %s1757_s15 = smov 0  }
   0x9   :  { %s1759_s16 = smov 0   ;;  %s1761_s17 = smov 0  }
   0xa   :  { %s1763_s18 = smov 0   ;;  %s1765_s19 = smov 0  }
   0xb LB: > { %s2234_s20 = sadd.s32 4294967295, %s1723_s19   ;;  %s31_s21 = sadd.s32 1, %s1715_s17  ;;  %s1723_s19 = sphi %s1765_s19, %s22_s19   ;;  %s1719_s18 = sphi %s1763_s18, %s2247_s18   ;;  %s1715_s17 = sphi %s1761_s17, %s2246_s17   ;;  %s1711_s16 = sphi %s1759_s16, %s2245_s16   ;;  %s1707_s15 = sphi %s1757_s15, %s2244_s15   ;;  %s1703_s14 = sphi %s1755_s14, %s2243_s14   ;;  %s1699_s13 = sphi %s1753_s13, %s2242_s13   ;;  %s1695_s12 = sphi %s1751_s12, %s2241_s12  }
   0xc   : > { %p32_p0 = scmp.ge.s32.totalorder %s31_s21, 3  ;;  %s34_s22 = sadd.s32 1, %s1719_s18 }
   0xd   : > { %s41_s23 = sadd.s32 1, %s1703_s14  ;;  %p48_p1 = scmp.ne.s32.totalorder %s1703_s14, %s1699_s13 }
   0xe   : > { %s2249_s21 = smov (%p32_p0, %s31_s21), 0  ;;  %s2251_s22 = smov (!%p32_p0, %s34_s22), %s1719_s18 }
   0xf   : > { %s38_s24 = ssub.s32 %s1715_s17, %s2249_s21  ;;  %p49_p2 = scmp.eq.s32.totalorder %s1723_s19, 0 }
  0x10   : > { %p36_p3 = scmp.ge.s32.totalorder %s2251_s22, 2  ;;  %p39_p4 = scmp.eq.s32.totalorder %s38_s24, 0 }
  0x11   : > { %p1801_p5 = por %p49_p2, %p48_p1  ;;  %p54_p6 = scmp.ne.s32.totalorder %s1699_s13, %s1695_s12 }
  0x12   : > { %s2253_s22 = smov (%p36_p3, %s2251_s22), 0  ;;  %p55_p7 = scmp.eq.s32.totalorder %s2234_s20, 0 }
  0x13   : > { %s1809_s26 = scalar_select %p39_p4, %s1703_s14, %s41_s23  }
  0x14   : > { %p1441_p8 = scmp.lt.s32.totalorder %s1723_s19, 6  ;;  %s146_s27 = sand.u32 1, %s1703_s14  }
  0x15   : > { %p1815_p9 = por %p55_p7, %p54_p6  ;;  %s1397_s29 = sshll.u32 %s146_s27, 3 }
  0x16   : > { %s1398_s30 = sshll.u32 %s1715_s17, 3  ;;  %s2238_s0 = sld [smem:[#allocation20_spill]] }
  0x17   : > { %s150_s8 = scalar_lea.vmem [#allocation8], %s1397_s29  ;;  %p1435_p10 = pnand %p1441_p8, %p1801_p5 }
  0x18   : > { %s158_s9 = sshll.u32 %s150_s8, 4  ;;  %p1401_p11 = scmp.ge.s32.totalorder %s1723_s19, 1  ;;  %s159_s9 = int_to_ptr.vmem [resolvable:$true] %s158_s9 }
  0x19   : > { %p182_p12 = scmp.lt.s32.totalorder %s1723_s19, 7  ;;  %s147_s10 = scalar_lea.sflag [#allocation9], %s146_s27 }
  0x1a   : > { %s173_s23 = scalar_lea.hbm %s2231_s1, %s1398_s30  ;;  %s169_s20 = scalar_lea.vmem [#allocation11], %s1397_s29 }
  0x1b   : > { %p183_p13 = pnand %p1401_p11, %p182_p12  ;;  %s175_s24 = sshll.u32 %s173_s23, 4  ;;  %s176_s24 = int_to_ptr.hbm [resolvable:$true] %s175_s24 }
  0x1c   : > { %s154_s6 = scalar_lea.hbm %s2238_s0, %s1398_s30  ;;  %s177_s4 = sshll.u32 %s169_s20, 4  ;;  %s178_s4 = int_to_ptr.vmem [resolvable:$true] %s177_s4 }
  0x1d   : > { %s156_s7 = sshll.u32 %s154_s6, 4  ;;  %s166_s5 = scalar_lea.sflag [#allocation12], %s146_s27  ;;  %s157_s7 = int_to_ptr.hbm [resolvable:$true] %s156_s7 }
  0x1e   : > { %1437 = dma.hbm_to_vmem [thread:$0]  (!%p1435_p10), %s157_s7, 128, %s159_s9, %s147_s10  }
  0x1f   : > { %1440 = dma.hbm_to_vmem [thread:$0]  (!%p1435_p10), %s176_s24, 128, %s178_s4, %s166_s5  }
  0x20   : > { %186 = sbr.rel (%p183_p13) target bundleno = 992 (0x3e0), region = 28  ;;  %s188_s25 = sand.u32 (!%p183_p13), 1, %s1699_s13  }
  0x21   : > { %s1402_s6 = sshll.u32 (!%p183_p13), %s188_s25, 3  ;;  %s189_s8 = scalar_lea.sflag (!%p183_p13), [#allocation9], %s188_s25 }
  0x22   : > { %s1831_s0 = scalar_lea.vmem (!%p183_p13), [#allocation8], %s1402_s6 }
  0x25   : > { %1678 = dma.done.wait (%p1815_p9), %s189_s8, 128  }
  0x26   : > { %1680 = vsyncadd (%p1815_p9), %s189_s8, 4294967168  ;;  %s199_s29 = scalar_lea.sflag [#allocation12], %s188_s25  ;;  %s1837_s20 = scalar_lea.vmem [#allocation11], %s1402_s6 }
  0x27   : > { %1682 = dma.done.wait (%p1815_p9), %s199_s29, 128  }
  0x28   : > { %1684 = vsyncadd (%p1815_p9), %s199_s29, 4294967168  ;;  %p226_p0 = scmp.eq.s32.totalorder %s1711_s16, 1  ;;  %p227_p1 = scmp.eq.s32.totalorder %s1711_s16, 0 }
  0x29   : > { %p228_p2 = scmp.eq.s32.totalorder %s1707_s15, 0 }
  0x2b   : > { %p229_p3 = pnand %p228_p2, %p227_p1 }
  0x2d   : > { %232 = sbr.rel (%p229_p3) target bundleno = 55 (0x37), region = 40 }
  0x32   : > { %v1725_v0 = vmov 0.0  }
  0x33   : > { %233 = vst [vmem:[#allocation4] sm:$0x1] %v1725_v0 }
  0x34   : > { %234 = vst [vmem:[#allocation5] sm:$0x1] %v1725_v0 }
  0x35   : > { %235 = vst [vmem:[#allocation6] sm:$0x1] %v1725_v0 }
  0x36   : > { %236 = vst [vmem:[#allocation7] sm:$0x1] %v1725_v0 }
  0x37 PF: > { %p1404_p4 = scmp.ne.s32.totalorder %s1711_s16, 0 }
  0x39   : > { %239 = sbr.rel (%p1404_p4) target bundleno = 81 (0x51), region = 44 }
  0x3e   : > { %v240_v1 = vld [vmem:[%s1831_s0] sm:$0xff]  ;;  %v241_v4 = vld [vmem:[%s1837_s20] sm:$0xff] }
  0x3f   : > { %v243_v2 = vrot.slane %v240_v1, 4  ;;  %v252_v3 = vmul.f32 %v240_v1, %v240_v1  ;;  %v262_v5 = vrot.slane %v241_v4, 4  ;;  %v271_v6 = vmul.f32 %v241_v4, %v241_v4  ;;  %v242_v21 = vld [vmem:[#allocation4] sm:$0x1]  ;;  %v261_v26 = vld [vmem:[#allocation6] sm:$0x1] }
  0x40   : > { %v251_v27 = vld [vmem:[#allocation5] sm:$0x1]  ;;  %v270_v32 = vld [vmem:[#allocation7] sm:$0x1] }
  0x41   : > { %v244_v7 = vadd.f32 %v243_v2, %v240_v1  ;;  %v253_v8 = vrot.slane %v252_v3, 4  ;;  %v263_v9 = vadd.f32 %v262_v5, %v241_v4  ;;  %v272_v10 = vrot.slane %v271_v6, 4 }
  0x43   : > { %v245_v11 = vrot.slane %v244_v7, 2  ;;  %v254_v12 = vadd.f32 %v253_v8, %v252_v3  ;;  %v264_v13 = vrot.slane %v263_v9, 2  ;;  %v273_v14 = vadd.f32 %v272_v10, %v271_v6 }
  0x45   : > { %v246_v15 = vadd.f32 %v245_v11, %v244_v7  ;;  %v255_v16 = vrot.slane %v254_v12, 2  ;;  %v265_v17 = vadd.f32 %v264_v13, %v263_v9  ;;  %v274_v18 = vrot.slane %v273_v14, 2 }
  0x47   : > { %v247_v19 = vrot.slane %v246_v15, 1  ;;  %v256_v20 = vadd.f32 %v255_v16, %v254_v12  ;;  %v266_v22 = vrot.slane %v265_v17, 1  ;;  %v275_v23 = vadd.f32 %v274_v18, %v273_v14 }
  0x49   : > { %v248_v24 = vadd.f32 %v247_v19, %v246_v15  ;;  %v257_v25 = vrot.slane %v256_v20, 1  ;;  %v267_v28 = vadd.f32 %v266_v22, %v265_v17  ;;  %v276_v29 = vrot.slane %v275_v23, 1 }
  0x4b   : > { %v249_v30 = vadd.f32 %v248_v24, %v242_v21  ;;  %v258_v31 = vadd.f32 %v257_v25, %v256_v20  ;;  %v268_v33 = vadd.f32 %v267_v28, %v261_v26  ;;  %v277_v34 = vadd.f32 %v276_v29, %v275_v23 }
  0x4d   : > { %250 = vst [vmem:[#allocation4] sm:$0x1] %v249_v30  ;;  %v259_v35 = vadd.f32 %v258_v31, %v251_v27  ;;  %v278_v36 = vadd.f32 %v277_v34, %v270_v32 }
  0x4e   : > { %269 = vst [vmem:[#allocation6] sm:$0x1] %v268_v33 }
  0x4f   : > { %260 = vst [vmem:[#allocation5] sm:$0x1] %v259_v35 }
  0x50   : > { %279 = vst [vmem:[#allocation7] sm:$0x1] %v278_v36 }
  0x51 PF: > { %p280_p5 = pnand %p228_p2, %p226_p0 }
  0x53   : > { %283 = sbr.rel (%p280_p5) target bundleno = 106 (0x6a), region = 48 }
  0x58   : > { %v1726_v37 = vmov 0.0  }
  0x59   : > { %284 = vst [vmem:[#allocation2 + $0x30] sm:$0xff] %v1726_v37 }
  0x5a   : > { %285 = vst [vmem:[#allocation2] sm:$0xff] %v1726_v37 }
  0x5b   : > { %286 = vst [vmem:[#allocation2 + $0x58] sm:$0xff] %v1726_v37 }
  0x5c   : > { %287 = vst [vmem:[#allocation2 + $0x18] sm:$0xff] %v1726_v37 }
  0x5d   : > { %288 = vst [vmem:[#allocation2 + $0x50] sm:$0xff] %v1726_v37 }
  0x5e   : > { %289 = vst [vmem:[#allocation2 + $0x68] sm:$0xff] %v1726_v37 }
  0x5f   : > { %290 = vst [vmem:[#allocation2 + $0x8] sm:$0xff] %v1726_v37 }
  0x60   : > { %291 = vst [vmem:[#allocation2 + $0x48] sm:$0xff] %v1726_v37 }
  0x61   : > { %292 = vst [vmem:[#allocation2 + $0x40] sm:$0xff] %v1726_v37 }
  0x62   : > { %293 = vst [vmem:[#allocation2 + $0x20] sm:$0xff] %v1726_v37 }
  0x63   : > { %294 = vst [vmem:[#allocation2 + $0x10] sm:$0xff] %v1726_v37 }
  0x64   : > { %295 = vst [vmem:[#allocation2 + $0x38] sm:$0xff] %v1726_v37 }
  0x65   : > { %296 = vst [vmem:[#allocation2 + $0x60] sm:$0xff] %v1726_v37 }
  0x66   : > { %297 = vst [vmem:[#allocation2 + $0x70] sm:$0xff] %v1726_v37 }
  0x67   : > { %298 = vst [vmem:[#allocation2 + $0x78] sm:$0xff] %v1726_v37 }
  0x68   : > { %299 = vst [vmem:[#allocation2 + $0x28] sm:$0xff] %v1726_v37 }
  0x69   : > { %300 = vst [vmem:[#allocation3] sm:$0x1] %v1726_v37 }
  0x6a PF: > { %p1405_p6 = scmp.ne.s32.totalorder %s1711_s16, 1 }
  0x6b   : > { %s1406_s27 = sshll.u32 (!%p1405_p6), %s1707_s15, 3 }
  0x6c   : > { %303 = sbr.rel (%p1405_p6) target bundleno = 754 (0x2f2), region = 52 }
  0x71   : > { %v1727_v38 = vmov 20.0   ;;  %v1728_v39 = vmov 19.0   ;;  %v306_v47 = vld [vmem:[#allocation4] sm:$0x1]  ;;  %v315_v49 = vld [vmem:[#allocation6] sm:$0x1]  ;;  %v408_v27 = vlaneseq  ;;  %v411_v35 = vstv %s1406_s27 }
  0x72   : > { %1517 = vrcp.f32 %v1727_v38  ;;  %v317_v56 = vld [vmem:[#allocation5] sm:$0x1]  ;;  %v330_v59 = vld [vmem:[#allocation7] sm:$0x1]  ;;  %v304_v36 = vld [vmem:[%s1831_s0] sm:$0xff]  ;;  %vm465_vm15 = vcmask 64512  }
  0x73   : > { %1519 = vrcp.f32 %v1728_v39  ;;  %v409_v32 = vshrl.u32 %v408_v27, 7 }
  0x78   : > { %v1518_v40 = vpop.eup %1517 }
  0x79   : > { %v1520_v41 = vpop.eup %1519  ;;  %v308_v42 = vmul.f32 20.0, %v1518_v40  ;;  %vm312_vm0 = vweird.f32 %v1518_v40 }
  0x7a   : > { %v323_v43 = vmul.f32 19.0, %v1520_v41  ;;  %vm327_vm1 = vweird.f32 %v1520_v41 }
  0x7b   : > { %v309_v44 = vsub.f32 1.0, %v308_v42 }
  0x7c   : > { %v324_v46 = vsub.f32 1.0, %v323_v43 }
  0x7d   : > { %v310_v45 = vmul.f32 %v1518_v40, %v309_v44 }
  0x7e   : > { %v325_v51 = vmul.f32 %v1520_v41, %v324_v46 }
  0x7f   : > { %v311_v48 = vadd.f32 %v1518_v40, %v310_v45 }
  0x80   : > { %v326_v57 = vadd.f32 %v1520_v41, %v325_v51  ;;  %v305_v51 = vld [vmem:[%s1837_s20] sm:$0xff] }
  0x81   : > { %v313_v50 = vsel %vm312_vm0, %v1518_v40, %v311_v48 }
  0x82   : > { %v1856_v52 = vmul.f32 %v313_v50, %v306_v47  ;;  %v1858_v53 = vmul.f32 %v315_v49, %v313_v50  ;;  %v328_v62 = vsel %vm327_vm1, %v1520_v41, %v326_v57  ;;  %v412_v41 = vadd.s32 %v411_v35, %v409_v32 }
  0x84   : > { %v318_v54 = vmul.f32 20.0, %v1856_v52  ;;  %v331_v55 = vmul.f32 20.0, %v1858_v53  ;;  %v393_v34 = vperm.slane %v1856_v52, 0  ;;  %v401_v50 = vperm.slane %v1858_v53, 0 }
  0x85   : > { %vm413_vm12 = vcmp.lt.s32.totalorder %v412_v41, 20 }
  0x86   : > { %v319_v58 = vmul.f32 %v318_v54, %v1856_v52  ;;  %v332_v60 = vmul.f32 %v331_v55, %v1858_v53  ;;  %v395_v44 = vsub.f32 %v304_v36, %v393_v34 }
  0x88   : > { %v320_v61 = vsub.f32 %v317_v56, %v319_v58  ;;  %v333_v63 = vsub.f32 %v330_v59, %v332_v60  ;;  %v403_v58 = vsub.f32 %v305_v51, %v401_v50 }
  0x8a   : > { %v321_v0 = vmax.f32 %v320_v61, 0.0  ;;  %v334_v2 = vmax.f32 %v333_v63, 0.0 }
  0x8c   : > { %v329_v1 = vmul.f32 %v328_v62, %v321_v0  ;;  %v335_v3 = vmul.f32 %v334_v2, %v328_v62 }
  0x8e   : > { %1521 = vrsqrt.f32 %v329_v1  ;;  %vm343_vm2 = vcmp.eq.f32.partialorder %v329_v1, inf  ;;  %v346_v12 = vand.u32 2147483648, %v329_v1  ;;  %vm345_vm3 = vcmp.eq.f32.partialorder %v329_v1, 0.0 }
  0x8f   : > { %1523 = vrsqrt.f32 %v335_v3  ;;  %vm371_vm4 = vcmp.eq.f32.partialorder %v335_v3, inf  ;;  %v374_v21 = vand.u32 2147483648, %v335_v3  ;;  %vm373_vm5 = vcmp.eq.f32.partialorder %v335_v3, 0.0 }
  0x94   : > { %v1522_v4 = vpop.eup %1521 }
  0x95   : > { %v337_v5 = vmul.f32 %v1522_v4, %v329_v1  ;;  %v1524_v8 = vpop.eup %1523 }
  0x96   : > { %v365_v10 = vmul.f32 %v1524_v8, %v335_v3 }
  0x97   : > { %v338_v6 = vmul.f32 %v1522_v4, %v337_v5 }
  0x98   : > { %v366_v13 = vmul.f32 %v1524_v8, %v365_v10 }
  0x99   : > { %v339_v7 = vmul.f32 0.5, %v338_v6 }
  0x9a   : > { %v367_v15 = vmul.f32 0.5, %v366_v13 }
  0x9b   : > { %v340_v9 = vsub.f32 1.5, %v339_v7 }
  0x9c   : > { %v368_v18 = vsub.f32 1.5, %v367_v15 }
  0x9d   : > { %v341_v11 = vmul.f32 %v1522_v4, %v340_v9  ;;  %v1157_v4 = vld [vmem:[#allocation3] sm:$0x1] }
  0x9e   : > { %v369_v20 = vmul.f32 %v1524_v8, %v368_v18 }
  0x9f   : > { %v342_v14 = vmul.f32 %v341_v11, %v329_v1 }
  0xa0   : > { %v370_v22 = vmul.f32 %v369_v20, %v335_v3 }
  0xa1   : > { %v344_v16 = vsel %vm343_vm2, %v329_v1, %v342_v14 }
  0xa2   : > { %v347_v17 = vsel %vm345_vm3, %v346_v12, %v344_v16  ;;  %v372_v23 = vsel %vm371_vm4, %v335_v3, %v370_v22 }
  0xa3   : > { %v348_v19 = vadd.f32 1e-06, %v347_v17  ;;  %v375_v24 = vsel %vm373_vm5, %v374_v21, %v372_v23 }
  0xa4   : > { %v376_v25 = vadd.f32 1e-06, %v375_v24 }
  0xa5   : > { %1525 = vrcp.f32 %v348_v19  ;;  %v360_v29 = vand.u32 2147483648, %v348_v19  ;;  %vm354_vm6 = vweird.f32 %v348_v19  ;;  %v358_v31 = vand.u32 2147483647, %v348_v19 }
  0xa6   : > { %1527 = vrcp.f32 %v376_v25  ;;  %vm382_vm10 = vweird.f32 %v376_v25  ;;  %v388_v43 = vand.u32 2147483648, %v376_v25  ;;  %v386_v47 = vand.u32 2147483647, %v376_v25 }
  0xa7   : > { %v361_v37 = vor.u32 1.1754944e-38, %v360_v29  ;;  %vm359_vm9 = vcmp.eq.f32.partialorder %v358_v31, 8.507059e+37 }
  0xa8   : > { %v389_v52 = vor.u32 1.1754944e-38, %v388_v43  ;;  %vm387_vm14 = vcmp.eq.f32.partialorder %v386_v47, 8.507059e+37 }
  0xab   : > { %v1526_v26 = vpop.eup %1525 }
  0xac   : > { %v350_v28 = vmul.f32 %v1526_v26, %v348_v19  ;;  %vm355_vm7 = vweird.f32 %v1526_v26  ;;  %v1528_v38 = vpop.eup %1527 }
  0xad   : > { %vm356_vm8 = vmor %vm354_vm6, %vm355_vm7  ;;  %v378_v40 = vmul.f32 %v1528_v38, %v376_v25  ;;  %vm383_vm11 = vweird.f32 %v1528_v38 }
  0xae   : > { %v351_v30 = vsub.f32 1.0, %v350_v28  ;;  %vm384_vm13 = vmor %vm382_vm10, %vm383_vm11 }
  0xaf   : > { %v379_v46 = vsub.f32 1.0, %v378_v40 }
  0xb0   : > { %v352_v33 = vmul.f32 %v1526_v26, %v351_v30 }
  0xb1   : > { %v380_v49 = vmul.f32 %v1528_v38, %v379_v46 }
  0xb2   : > { %v353_v39 = vadd.f32 %v1526_v26, %v352_v33 }
  0xb3   : > { %v381_v55 = vadd.f32 %v1528_v38, %v380_v49 }
  0xb4   : > { %v357_v42 = vsel %vm356_vm8, %v1526_v26, %v353_v39 }
  0xb5   : > { %v362_v45 = vsel %vm359_vm9, %v361_v37, %v357_v42  ;;  %v385_v57 = vsel %vm384_vm13, %v1528_v38, %v381_v55 }
  0xb6   : > { %v397_v48 = vperm.slane %v362_v45, 0  ;;  %v390_v59 = vsel %vm387_vm14, %v389_v52, %v385_v57 }
  0xb7   : > { %v405_v60 = vperm.slane %v390_v59, 0 }
  0xb8   : > { %v399_v54 = vmul.f32 %v397_v48, %v395_v44 }
  0xb9   : > { %v407_v61 = vmul.f32 %v405_v60, %v403_v58 }
  0xba   : > { %v416_v56 = vsel %vm413_vm12, %v399_v54, 0.0 }
  0xbb   : > { %433 = vxpose.xlu0.b32.start.end [1/1] (short) %v416_v56, 128  ;;  %v529_v62 = vand.u32 4294901760, %v407_v61  ;;  %v1158_v63 = vmul.f32 %v416_v56, %v407_v61 }
  0xbd   : > { %v1159_v0 = vrot.slane %v1158_v63, 4  ;;  %530 = vmatpush.msra.mxu0 %v529_v62  ;;  %1414 = vmatpush.msra.mxu2 %v529_v62  ;;  %v676_v7 = vsub.f32 %v407_v61, %v529_v62 }
  0xbf   : > { %v1160_v53 = vadd.f32 %v1159_v0, %v1158_v63  ;;  %v677_v8 = vand.u32 4294901760, %v676_v7  ;;  %763 = vmatpush.msrb.mxu2 %v676_v7 }
  0xc1   : > { %v1161_v1 = vrot.slane %v1160_v53, 2  ;;  %v678_v9 = vsub.f32 %v676_v7, %v677_v8  ;;  %977 = vmatpush.msrb.mxu0 %v677_v8 }
  0xc3   : > { %v1162_v2 = vadd.f32 %v1161_v1, %v1160_v53  ;;  %v679_v10 = vand.u32 4294901760, %v678_v9 }
  0xc5   : > { %v1163_v3 = vrot.slane %v1162_v2, 1  ;;  %680 = vmatpush.msra.mxu1 %v679_v10  ;;  %1415 = vmatpush.msra.mxu3 %v679_v10 }
  0xc7   : > { %v1164_v5 = vadd.f32 %v1163_v3, %v1162_v2  ;;  %1059 = vmatpush.msrb.mxu1 %v529_v62  ;;  %861 = vmatpush.msrb.mxu3 %v529_v62 }
  0xc9   : > { %v1165_v6 = vadd.f32 %v1164_v5, %v1157_v4 }
  0xcb   : > { %1166 = vst [vmem:[#allocation3] sm:$0x1] %v1165_v6 }
 0x15f   : > { %v449_v11 = vpop.trf.xlu0 }
 0x160   : > { %v467_v12 = vsel %vm465_vm15, %v449_v11, 0 }
 0x161   : > { %v1870_v13 = vand.u32 4294901760, %v467_v12 }
 0x163   : > { %v1873_v14 = vsub.f32 %v467_v12, %v1870_v13  ;;  %682 = vmatmul.f32.vlgmr.msra.gmra.mxu1 %v1870_v13 }
 0x165   : > { %v533_v15 = vand.u32 4294901760, %v1873_v14 }
 0x167   : > { %v450_v16 = vpop.trf.xlu0  ;;  %v534_v17 = vsub.f32 %v1873_v14, %v533_v15 }
 0x168   : > { %v470_v18 = vsel %vm465_vm15, %v450_v16, 0 }
 0x169   : > { %v1881_v19 = vand.u32 4294901760, %v470_v18  ;;  %v535_v20 = vand.u32 4294901760, %v534_v17 }
 0x16b   : > { %v1884_v21 = vsub.f32 %v470_v18, %v1881_v19  ;;  %536 = vmatmul.f32.vlgmr.msra.gmra.mxu0 %v535_v20  ;;  %686 = vmatmul.f32.gmra.mxu1 %v1881_v19 }
 0x16d   : > { %v541_v22 = vand.u32 4294901760, %v1884_v21 }
 0x16f   : > { %v451_v23 = vpop.trf.xlu0  ;;  %v542_v24 = vsub.f32 %v1884_v21, %v541_v22 }
 0x170   : > { %v473_v25 = vsel %vm465_vm15, %v451_v23, 0 }
 0x171   : > { %v1892_v26 = vand.u32 4294901760, %v473_v25  ;;  %v543_v27 = vand.u32 4294901760, %v542_v24 }
 0x173   : > { %v1895_v28 = vsub.f32 %v473_v25, %v1892_v26  ;;  %544 = vmatmul.f32.gmra.mxu0 %v543_v27  ;;  %690 = vmatmul.f32.gmra.mxu1 %v1892_v26 }
 0x175   : > { %v549_v29 = vand.u32 4294901760, %v1895_v28 }
 0x177   : > { %v452_v30 = vpop.trf.xlu0  ;;  %v550_v31 = vsub.f32 %v1895_v28, %v549_v29 }
 0x178   : > { %v476_v32 = vsel %vm465_vm15, %v452_v30, 0 }
 0x179   : > { %v1903_v33 = vand.u32 4294901760, %v476_v32  ;;  %v551_v34 = vand.u32 4294901760, %v550_v31 }
 0x17b   : > { %v1906_v35 = vsub.f32 %v476_v32, %v1903_v33  ;;  %552 = vmatmul.f32.gmra.mxu0 %v551_v34  ;;  %694 = vmatmul.f32.gmra.mxu1 %v1903_v33 }
 0x17d   : > { %v557_v36 = vand.u32 4294901760, %v1906_v35 }
 0x17f   : > { %v453_v37 = vpop.trf.xlu0  ;;  %v558_v38 = vsub.f32 %v1906_v35, %v557_v36 }
 0x180   : > { %v479_v39 = vsel %vm465_vm15, %v453_v37, 0 }
 0x181   : > { %v1914_v40 = vand.u32 4294901760, %v479_v39  ;;  %v559_v41 = vand.u32 4294901760, %v558_v38 }
 0x183   : > { %v1917_v42 = vsub.f32 %v479_v39, %v1914_v40  ;;  %560 = vmatmul.f32.gmra.mxu0 %v559_v41  ;;  %698 = vmatmul.f32.gmra.mxu1 %v1914_v40 }
 0x185   : > { %v565_v43 = vand.u32 4294901760, %v1917_v42 }
 0x187   : > { %v454_v44 = vpop.trf.xlu0  ;;  %v566_v45 = vsub.f32 %v1917_v42, %v565_v43 }
 0x188   : > { %v482_v46 = vsel %vm465_vm15, %v454_v44, 0 }
 0x189   : > { %v1925_v47 = vand.u32 4294901760, %v482_v46  ;;  %v567_v48 = vand.u32 4294901760, %v566_v45 }
 0x18b   : > { %v1928_v49 = vsub.f32 %v482_v46, %v1925_v47  ;;  %568 = vmatmul.f32.gmra.mxu0 %v567_v48  ;;  %702 = vmatmul.f32.gmra.mxu1 %v1925_v47 }
 0x18d   : > { %v573_v50 = vand.u32 4294901760, %v1928_v49 }
 0x18f   : > { %v455_v51 = vpop.trf.xlu0  ;;  %v574_v52 = vsub.f32 %v1928_v49, %v573_v50 }
 0x190   : > { %v485_v54 = vsel %vm465_vm15, %v455_v51, 0 }
 0x191   : > { %v1936_v55 = vand.u32 4294901760, %v485_v54  ;;  %v575_v56 = vand.u32 4294901760, %v574_v52 }
 0x193   : > { %v1939_v57 = vsub.f32 %v485_v54, %v1936_v55  ;;  %576 = vmatmul.f32.gmra.mxu0 %v575_v56  ;;  %706 = vmatmul.f32.gmra.mxu1 %v1936_v55 }
 0x195   : > { %v581_v58 = vand.u32 4294901760, %v1939_v57 }
 0x197   : > { %v456_v59 = vpop.trf.xlu0  ;;  %v582_v60 = vsub.f32 %v1939_v57, %v581_v58 }
 0x198   : > { %v488_v61 = vsel %vm465_vm15, %v456_v59, 0 }
 0x199   : > { %v1947_v62 = vand.u32 4294901760, %v488_v61  ;;  %v583_v63 = vand.u32 4294901760, %v582_v60 }
 0x19b   : > { %v1950_v0 = vsub.f32 %v488_v61, %v1947_v62  ;;  %584 = vmatmul.f32.gmra.mxu0 %v583_v63  ;;  %710 = vmatmul.f32.gmra.mxu1 %v1947_v62 }
 0x19d   : > { %v589_v53 = vand.u32 4294901760, %v1950_v0 }
 0x19f   : > { %v457_v1 = vpop.trf.xlu0  ;;  %v590_v2 = vsub.f32 %v1950_v0, %v589_v53 }
 0x1a0   : > { %v491_v3 = vsel %vm465_vm15, %v457_v1, 0 }
 0x1a1   : > { %v1958_v4 = vand.u32 4294901760, %v491_v3  ;;  %v591_v5 = vand.u32 4294901760, %v590_v2 }
 0x1a3   : > { %v1961_v6 = vsub.f32 %v491_v3, %v1958_v4  ;;  %592 = vmatmul.f32.gmra.mxu0 %v591_v5  ;;  %714 = vmatmul.f32.vlgmr.msra.gmra.mxu3 %v1958_v4 }
 0x1a4   : > { %1061 = vmatmul.f32.vlgmr.msrb.gmra.mxu1 %v1870_v13 }
 0x1a5   : > { %v597_v7 = vand.u32 4294901760, %v1961_v6 }
 0x1a7   : > { %v458_v8 = vpop.trf.xlu0  ;;  %v598_v9 = vsub.f32 %v1961_v6, %v597_v7 }
 0x1a8   : > { %v494_v10 = vsel %vm465_vm15, %v458_v8, 0 }
 0x1a9   : > { %v1970_v11 = vand.u32 4294901760, %v494_v10  ;;  %v599_v12 = vand.u32 4294901760, %v598_v9 }
 0x1ab   : > { %v1973_v16 = vsub.f32 %v494_v10, %v1970_v11  ;;  %600 = vmatmul.f32.vlgmr.msra.gmra.mxu2 %v599_v12  ;;  %718 = vmatmul.f32.gmra.mxu3 %v1970_v11 }
 0x1ac   : > { %979 = vmatmul.f32.vlgmr.msrb.gmra.mxu0 %v1870_v13  ;;  %1065 = vmatmul.f32.gmra.mxu1 %v1881_v19 }
 0x1ad   : > { %v605_v17 = vand.u32 4294901760, %v1973_v16 }
 0x1af   : > { %v459_v18 = vpop.trf.xlu0  ;;  %v606_v20 = vsub.f32 %v1973_v16, %v605_v17 }
 0x1b0   : > { %v497_v23 = vsel %vm465_vm15, %v459_v18, 0 }
 0x1b1   : > { %v1983_v24 = vand.u32 4294901760, %v497_v23  ;;  %v607_v25 = vand.u32 4294901760, %v606_v20 }
 0x1b3   : > { %v1986_v27 = vsub.f32 %v497_v23, %v1983_v24  ;;  %608 = vmatmul.f32.gmra.mxu2 %v607_v25  ;;  %722 = vmatmul.f32.gmra.mxu3 %v1983_v24 }
 0x1b4   : > { %983 = vmatmul.f32.gmra.mxu0 %v1881_v19  ;;  %1069 = vmatmul.f32.gmra.mxu1 %v1892_v26 }
 0x1b5   : > { %v613_v13 = vand.u32 4294901760, %v1986_v27 }
 0x1b7   : > { %v460_v30 = vpop.trf.xlu0  ;;  %v614_v31 = vsub.f32 %v1986_v27, %v613_v13 }
 0x1b8   : > { %v500_v32 = vsel %vm465_vm15, %v460_v30, 0 }
 0x1b9   : > { %v1996_v34 = vand.u32 4294901760, %v500_v32  ;;  %v615_v37 = vand.u32 4294901760, %v614_v31 }
 0x1bb   : > { %v1999_v38 = vsub.f32 %v500_v32, %v1996_v34  ;;  %616 = vmatmul.f32.gmra.mxu2 %v615_v37  ;;  %726 = vmatmul.f32.gmra.mxu3 %v1996_v34 }
 0x1bc   : > { %987 = vmatmul.f32.gmra.mxu0 %v1892_v26  ;;  %1073 = vmatmul.f32.gmra.mxu1 %v1903_v33 }
 0x1bd   : > { %v621_v19 = vand.u32 4294901760, %v1999_v38 }
 0x1bf   : > { %v461_v39 = vpop.trf.xlu0  ;;  %v622_v41 = vsub.f32 %v1999_v38, %v621_v19 }
 0x1c0   : > { %v503_v44 = vsel %vm465_vm15, %v461_v39, 0 }
 0x1c1   : > { %v2009_v45 = vand.u32 4294901760, %v503_v44  ;;  %v623_v46 = vand.u32 4294901760, %v622_v41 }
 0x1c3   : > { %v2012_v48 = vsub.f32 %v503_v44, %v2009_v45  ;;  %624 = vmatmul.f32.gmra.mxu2 %v623_v46  ;;  %730 = vmatmul.f32.gmra.mxu3 %v2009_v45 }
 0x1c4   : > { %991 = vmatmul.f32.gmra.mxu0 %v1903_v33  ;;  %1077 = vmatmul.f32.gmra.mxu1 %v1914_v40 }
 0x1c5   : > { %v629_v26 = vand.u32 4294901760, %v2012_v48 }
 0x1c7   : > { %v462_v51 = vpop.trf.xlu0  ;;  %v630_v52 = vsub.f32 %v2012_v48, %v629_v26 }
 0x1c8   : > { %v506_v54 = vsel %vm465_vm15, %v462_v51, 0 }
 0x1c9   : > { %v635_v56 = vand.u32 4294901760, %v506_v54  ;;  %v631_v59 = vand.u32 4294901760, %v630_v52 }
 0x1cb   : > { %v2022_v60 = vsub.f32 %v506_v54, %v635_v56  ;;  %632 = vmatmul.f32.gmra.mxu2 %v631_v59  ;;  %734 = vmatmul.f32.gmra.mxu3 %v635_v56 }
 0x1cc   : > { %995 = vmatmul.f32.gmra.mxu0 %v1914_v40  ;;  %1081 = vmatmul.f32.gmra.mxu1 %v1925_v47 }
 0x1cd   : > { %v637_v33 = vand.u32 4294901760, %v2022_v60 }
 0x1cf   : > { %v463_v61 = vpop.trf.xlu0  ;;  %v638_v63 = vsub.f32 %v2022_v60, %v637_v33 }
 0x1d0   : > { %v509_v1 = vsel %vm465_vm15, %v463_v61, 0 }
 0x1d1   : > { %v643_v2 = vand.u32 4294901760, %v509_v1  ;;  %v639_v3 = vand.u32 4294901760, %v638_v63 }
 0x1d3   : > { %v2031_v5 = vsub.f32 %v509_v1, %v643_v2  ;;  %640 = vmatmul.f32.gmra.mxu2 %v639_v3  ;;  %738 = vmatmul.f32.gmra.mxu3 %v643_v2 }
 0x1d4   : > { %999 = vmatmul.f32.gmra.mxu0 %v1925_v47  ;;  %1085 = vmatmul.f32.gmra.mxu1 %v1936_v55 }
 0x1d5   : > { %v645_v40 = vand.u32 4294901760, %v2031_v5 }
 0x1d7   : > { %v464_v8 = vpop.trf.xlu0  ;;  %v646_v9 = vsub.f32 %v2031_v5, %v645_v40 }
 0x1d8   : > { %v512_v10 = vsel %vm465_vm15, %v464_v8, 0  ;;  %v417_v8 = vld [vmem:[#allocation2 + $0x30] sm:$0xff] }
 0x1d9   : > { %v651_v12 = vand.u32 4294901760, %v512_v10  ;;  %v647_v18 = vand.u32 4294901760, %v646_v9 }
 0x1db   : > { %v2040_v20 = vsub.f32 %v512_v10, %v651_v12  ;;  %648 = vmatmul.f32.gmra.mxu2 %v647_v18  ;;  %742 = vmatmul.f32.gmra.mxu3 %v651_v12 }
 0x1dc   : > { %1003 = vmatmul.f32.gmra.mxu0 %v1936_v55  ;;  %1089 = vmatmul.f32.gmra.mxu1 %v1947_v62 }
 0x1dd   : > { %v653_v47 = vand.u32 4294901760, %v2040_v20 }
 0x1df   : > { %v654_v23 = vsub.f32 %v2040_v20, %v653_v47 }
 0x1e1   : > { %v655_v25 = vand.u32 4294901760, %v654_v23 }
 0x1e3   : > { %656 = vmatmul.f32.gmra.mxu2 %v655_v25  ;;  %865 = vmatmul.f32.vlgmr.msrb.gmra.mxu3 %v533_v15  ;;  %v2074_v15 = vpop.f32.mrf.mxu1 }
 0x1e4   : > { %1007 = vmatmul.f32.gmra.mxu0 %v1947_v62  ;;  %1093 = vmatmul.f32.gmra.mxu1 %v1958_v4 }
 0x1eb   : > { %766 = vmatmul.f32.vlgmr.msrb.gmra.mxu2 %v1873_v14  ;;  %871 = vmatmul.f32.gmra.mxu3 %v541_v22  ;;  %v2067_v14 = vpop.f32.mrf.mxu0  ;;  %v2082_v22 = vpop.f32.mrf.mxu1 }
 0x1ec   : > { %1011 = vmatmul.f32.gmra.mxu0 %v1958_v4  ;;  %1097 = vmatmul.f32.gmra.mxu1 %v1970_v11 }
 0x1f3   : > { %771 = vmatmul.f32.gmra.mxu2 %v1884_v21  ;;  %877 = vmatmul.f32.gmra.mxu3 %v549_v29  ;;  %v2080_v21 = vpop.f32.mrf.mxu0  ;;  %v2089_v29 = vpop.f32.mrf.mxu1 }
 0x1f4   : > { %1015 = vmatmul.f32.gmra.mxu0 %v1970_v11  ;;  %1101 = vmatmul.f32.gmra.mxu1 %v1983_v24  ;;  %v688_v9 = vadd.f32 %v2082_v22, %v2080_v21 }
 0x1fb   : > { %776 = vmatmul.f32.gmra.mxu2 %v1895_v28  ;;  %883 = vmatmul.f32.gmra.mxu3 %v557_v36  ;;  %v2087_v28 = vpop.f32.mrf.mxu0  ;;  %v2096_v36 = vpop.f32.mrf.mxu1 }
 0x1fc   : > { %1019 = vmatmul.f32.gmra.mxu0 %v1983_v24  ;;  %1105 = vmatmul.f32.gmra.mxu1 %v1996_v34 }
 0x203   : > { %781 = vmatmul.f32.gmra.mxu2 %v1906_v35  ;;  %889 = vmatmul.f32.gmra.mxu3 %v565_v43  ;;  %v2094_v35 = vpop.f32.mrf.mxu0 }
 0x204   : > { %1023 = vmatmul.f32.gmra.mxu0 %v1996_v34  ;;  %1109 = vmatmul.f32.gmra.mxu1 %v2009_v45 }
 0x20b   : > { %786 = vmatmul.f32.gmra.mxu2 %v1917_v42  ;;  %895 = vmatmul.f32.gmra.mxu3 %v573_v50  ;;  %v2101_v43 = vpop.f32.mrf.mxu0 }
 0x20c   : > { %1027 = vmatmul.f32.gmra.mxu0 %v2009_v45  ;;  %1113 = vmatmul.f32.gmra.mxu1 %v635_v56 }
 0x213   : > { %791 = vmatmul.f32.gmra.mxu2 %v1928_v49  ;;  %901 = vmatmul.f32.gmra.mxu3 %v581_v58  ;;  %v2106_v49 = vpop.f32.mrf.mxu1  ;;  %v2113_v58 = vpop.f32.mrf.mxu0 }
 0x214   : > { %1031 = vmatmul.f32.gmra.mxu0 %v635_v56  ;;  %1117 = vmatmul.f32.gmra.mxu1 %v643_v2 }
 0x21b   : > { %796 = vmatmul.f32.gmra.mxu2 %v1939_v57  ;;  %907 = vmatmul.f32.gmra.mxu3 %v589_v53  ;;  %v2115_v53 = vpop.f32.mrf.mxu1  ;;  %v2122_v11 = vpop.f32.mrf.mxu0 }
 0x21c   : > { %1035 = vmatmul.f32.gmra.mxu0 %v643_v2  ;;  %1121 = vmatmul.f32.gmra.mxu1 %v651_v12 }
 0x223   : > { %801 = vmatmul.f32.gmra.mxu2 %v1950_v0  ;;  %913 = vmatmul.f32.gmra.mxu3 %v597_v7 }
 0x224   : > { %1039 = vmatmul.f32.gmra.mxu0 %v651_v12 }
 0x226   : > { %v715_v42 = vpop.f32.mrf.mxu3 }
 0x22b   : > { %806 = vmatmul.f32.gmra.mxu2 %v1961_v6  ;;  %919 = vmatmul.f32.gmra.mxu3 %v605_v17  ;;  %v2126_v17 = vpop.f32.mrf.mxu1 }
 0x22e   : > { %v601_v50 = vpop.f32.mrf.mxu2  ;;  %v719_v55 = vpop.f32.mrf.mxu3 }
 0x22f   : > { %v2108_v57 = vadd.f32 %v715_v42, %v601_v50  ;;  %v692_v42 = vadd.f32 %v2089_v29, %v2087_v28 }
 0x233   : > { %811 = vmatmul.f32.gmra.mxu2 %v1973_v16  ;;  %925 = vmatmul.f32.gmra.mxu3 %v613_v13  ;;  %v2135_v31 = vpop.f32.mrf.mxu1 }
 0x236   : > { %v609_v62 = vpop.f32.mrf.mxu2  ;;  %v723_v0 = vpop.f32.mrf.mxu3 }
 0x237   : > { %v2117_v4 = vadd.f32 %v719_v55, %v609_v62 }
 0x23b   : > { %816 = vmatmul.f32.gmra.mxu2 %v1986_v27  ;;  %931 = vmatmul.f32.gmra.mxu3 %v621_v19  ;;  %v2133_v27 = vpop.f32.mrf.mxu0  ;;  %v1062_v19 = vpop.f32.mrf.mxu1 }
 0x23e   : > { %v617_v6 = vpop.f32.mrf.mxu2  ;;  %v727_v7 = vpop.f32.mrf.mxu3 }
 0x23f   : > { %v2124_v16 = vadd.f32 %v723_v0, %v617_v6 }
 0x243   : > { %821 = vmatmul.f32.gmra.mxu2 %v1999_v38  ;;  %937 = vmatmul.f32.gmra.mxu3 %v629_v26  ;;  %v980_v38 = vpop.f32.mrf.mxu0  ;;  %v1066_v26 = vpop.f32.mrf.mxu1 }
 0x246   : > { %v625_v24 = vpop.f32.mrf.mxu2  ;;  %v731_v13 = vpop.f32.mrf.mxu3 }
 0x247   : > { %v2131_v30 = vadd.f32 %v727_v7, %v625_v24  ;;  %v419_v24 = vld [vmem:[#allocation2 + $0x58] sm:$0xff] }
 0x24b   : > { %826 = vmatmul.f32.gmra.mxu2 %v2012_v48  ;;  %943 = vmatmul.f32.gmra.mxu3 %v637_v33  ;;  %v984_v45 = vpop.f32.mrf.mxu0  ;;  %v684_v33 = vadd.f32 %v2074_v15, %v2067_v14  ;;  %v418_v15 = vld [vmem:[#allocation2] sm:$0xff] }
 0x24e   : > { %v633_v32 = vpop.f32.mrf.mxu2  ;;  %v735_v34 = vpop.f32.mrf.mxu3 }
 0x24f   : > { %v2140_v37 = vadd.f32 %v731_v13, %v633_v32  ;;  %v696_v13 = vadd.f32 %v2096_v36, %v2094_v35 }
 0x253   : > { %831 = vmatmul.f32.gmra.mxu2 %v2022_v60  ;;  %949 = vmatmul.f32.gmra.mxu3 %v645_v40  ;;  %v988_v56 = vpop.f32.mrf.mxu0  ;;  %v1070_v60 = vpop.f32.mrf.mxu1 }
 0x256   : > { %v641_v39 = vpop.f32.mrf.mxu2  ;;  %v739_v41 = vpop.f32.mrf.mxu3 }
 0x257   : > { %v2145_v44 = vadd.f32 %v735_v34, %v641_v39 }
 0x25b   : > { %836 = vmatmul.f32.gmra.mxu2 %v2031_v5  ;;  %955 = vmatmul.f32.gmra.mxu3 %v653_v47  ;;  %v992_v2 = vpop.f32.mrf.mxu0  ;;  %v1074_v5 = vpop.f32.mrf.mxu1 }
 0x25e   : > { %v649_v46 = vpop.f32.mrf.mxu2  ;;  %v743_v48 = vpop.f32.mrf.mxu3 }
 0x25f   : > { %v2150_v51 = vadd.f32 %v739_v41, %v649_v46  ;;  %v420_v46 = vld [vmem:[#allocation2 + $0x18] sm:$0xff] }
 0x263   : > { %841 = vmatmul.f32.gmra.mxu2 %v2040_v20  ;;  %v996_v25 = vpop.f32.mrf.mxu0  ;;  %v1078_v50 = vpop.f32.mrf.mxu1 }
 0x266   : > { %v657_v52 = vpop.f32.mrf.mxu2  ;;  %v866_v54 = vpop.f32.mrf.mxu3 }
 0x267   : > { %v2153_v59 = vadd.f32 %v743_v48, %v657_v52  ;;  %v700_v48 = vadd.f32 %v2106_v49, %v2101_v43 }
 0x26b   : > { %v1000_v32 = vpop.f32.mrf.mxu0  ;;  %v1082_v39 = vpop.f32.mrf.mxu1 }
 0x26e   : > { %v767_v61 = vpop.f32.mrf.mxu2  ;;  %v872_v63 = vpop.f32.mrf.mxu3 }
 0x26f   : > { %v768_v1 = vadd.f32 %v767_v61, %v684_v33 }
 0x271   : > { %v867_v3 = vadd.f32 %v866_v54, %v768_v1  ;;  %v704_v1 = vadd.f32 %v2115_v53, %v2113_v58 }
 0x273   : > { %v981_v40 = vadd.f32 %v980_v38, %v867_v3  ;;  %v1086_v36 = vpop.f32.mrf.mxu1 }
 0x275   : > { %v1063_v10 = vadd.f32 %v1062_v19, %v981_v40 }
 0x276   : > { %v772_v12 = vpop.f32.mrf.mxu2  ;;  %v878_v18 = vpop.f32.mrf.mxu3 }
 0x277   : > { %v1125_v20 = vadd.f32 %v1063_v10, %v417_v8  ;;  %v773_v47 = vadd.f32 %v772_v12, %v688_v9  ;;  %v422_v12 = vld [vmem:[#allocation2 + $0x68] sm:$0xff] }
 0x279   : > { %1141 = vst [vmem:[#allocation2 + $0x30] sm:$0xff] %v1125_v20  ;;  %v873_v23 = vadd.f32 %v872_v63, %v773_v47  ;;  %v421_v63 = vld [vmem:[#allocation2 + $0x50] sm:$0xff] }
 0x27b   : > { %v985_v14 = vadd.f32 %v984_v45, %v873_v23 }
 0x27d   : > { %v1067_v55 = vadd.f32 %v1066_v26, %v985_v14 }
 0x27e   : > { %v777_v62 = vpop.f32.mrf.mxu2  ;;  %v884_v0 = vpop.f32.mrf.mxu3 }
 0x27f   : > { %v1126_v6 = vadd.f32 %v1067_v55, %v418_v15  ;;  %v778_v7 = vadd.f32 %v777_v62, %v692_v42  ;;  %v423_v42 = vld [vmem:[#allocation2 + $0x8] sm:$0xff] }
 0x281   : > { %1142 = vst [vmem:[#allocation2] sm:$0xff] %v1126_v6  ;;  %v879_v21 = vadd.f32 %v878_v18, %v778_v7  ;;  %v708_v18 = vadd.f32 %v2126_v17, %v2122_v11 }
 0x283   : > { %v989_v22 = vadd.f32 %v988_v56, %v879_v21  ;;  %v1004_v56 = vpop.f32.mrf.mxu0 }
 0x285   : > { %v1071_v34 = vadd.f32 %v1070_v60, %v989_v22  ;;  %v424_v22 = vld [vmem:[#allocation2 + $0x48] sm:$0xff] }
 0x286   : > { %v782_v38 = vpop.f32.mrf.mxu2  ;;  %v890_v19 = vpop.f32.mrf.mxu3 }
 0x287   : > { %v1127_v41 = vadd.f32 %v1071_v34, %v419_v24  ;;  %v783_v28 = vadd.f32 %v782_v38, %v696_v13 }
 0x289   : > { %1143 = vst [vmem:[#allocation2 + $0x58] sm:$0xff] %v1127_v41  ;;  %v885_v29 = vadd.f32 %v884_v0, %v783_v28  ;;  %v425_v41 = vld [vmem:[#allocation2 + $0x40] sm:$0xff] }
 0x28b   : > { %v993_v45 = vadd.f32 %v992_v2, %v885_v29  ;;  %v1008_v43 = vpop.f32.mrf.mxu0 }
 0x28d   : > { %v1075_v26 = vadd.f32 %v1074_v5, %v993_v45  ;;  %v1090_v5 = vpop.f32.mrf.mxu1 }
 0x28e   : > { %v787_v52 = vpop.f32.mrf.mxu2  ;;  %v896_v54 = vpop.f32.mrf.mxu3 }
 0x28f   : > { %v1128_v33 = vadd.f32 %v1075_v26, %v420_v46  ;;  %v788_v35 = vadd.f32 %v787_v52, %v700_v48 }
 0x291   : > { %1144 = vst [vmem:[#allocation2 + $0x18] sm:$0xff] %v1128_v33  ;;  %v891_v60 = vadd.f32 %v890_v19, %v788_v35  ;;  %v426_v33 = vld [vmem:[#allocation2 + $0x20] sm:$0xff] }
 0x293   : > { %v997_v61 = vadd.f32 %v996_v25, %v891_v60  ;;  %v1012_v53 = vpop.f32.mrf.mxu0 }
 0x295   : > { %v1079_v3 = vadd.f32 %v1078_v50, %v997_v61  ;;  %v712_v50 = vadd.f32 %v2135_v31, %v2133_v27  ;;  %v1094_v55 = vpop.f32.mrf.mxu1 }
 0x296   : > { %v792_v2 = vpop.f32.mrf.mxu2  ;;  %v902_v40 = vpop.f32.mrf.mxu3 }
 0x297   : > { %v1129_v8 = vadd.f32 %v1079_v3, %v421_v63  ;;  %v793_v9 = vadd.f32 %v792_v2, %v704_v1 }
 0x299   : > { %1145 = vst [vmem:[#allocation2 + $0x50] sm:$0xff] %v1129_v8  ;;  %v897_v49 = vadd.f32 %v896_v54, %v793_v9 }
 0x29b   : > { %v1001_v10 = vadd.f32 %v1000_v32, %v897_v49  ;;  %v1016_v24 = vpop.f32.mrf.mxu0 }
 0x29d   : > { %v1083_v20 = vadd.f32 %v1082_v39, %v1001_v10  ;;  %v1098_v39 = vpop.f32.mrf.mxu1 }
 0x29e   : > { %v797_v47 = vpop.f32.mrf.mxu2  ;;  %v908_v23 = vpop.f32.mrf.mxu3 }
 0x29f   : > { %v1130_v25 = vadd.f32 %v1083_v20, %v422_v12  ;;  %v798_v14 = vadd.f32 %v797_v47, %v708_v18  ;;  %v428_v18 = vld [vmem:[#allocation2 + $0x38] sm:$0xff] }
 0x2a1   : > { %1146 = vst [vmem:[#allocation2 + $0x68] sm:$0xff] %v1130_v25  ;;  %v903_v58 = vadd.f32 %v902_v40, %v798_v14  ;;  %v427_v40 = vld [vmem:[#allocation2 + $0x10] sm:$0xff] }
 0x2a3   : > { %v1005_v15 = vadd.f32 %v1004_v56, %v903_v58  ;;  %v1020_v26 = vpop.f32.mrf.mxu0 }
 0x2a5   : > { %v1087_v62 = vadd.f32 %v1086_v36, %v1005_v15  ;;  %v1102_v54 = vpop.f32.mrf.mxu1 }
 0x2a6   : > { %v802_v0 = vpop.f32.mrf.mxu2  ;;  %v914_v6 = vpop.f32.mrf.mxu3 }
 0x2a7   : > { %v1131_v7 = vadd.f32 %v1087_v62, %v423_v42  ;;  %v803_v21 = vadd.f32 %v802_v0, %v712_v50 }
 0x2a9   : > { %1147 = vst [vmem:[#allocation2 + $0x8] sm:$0xff] %v1131_v7  ;;  %v909_v11 = vadd.f32 %v908_v23, %v803_v21  ;;  %v430_v21 = vld [vmem:[#allocation2 + $0x70] sm:$0xff] }
 0x2ab   : > { %v1009_v17 = vadd.f32 %v1008_v43, %v909_v11  ;;  %v1024_v1 = vpop.f32.mrf.mxu0 }
 0x2ad   : > { %v1091_v13 = vadd.f32 %v1090_v5, %v1009_v17  ;;  %v1106_v2 = vpop.f32.mrf.mxu1 }
 0x2ae   : > { %v807_v32 = vpop.f32.mrf.mxu2  ;;  %v920_v34 = vpop.f32.mrf.mxu3 }
 0x2af   : > { %v1132_v38 = vadd.f32 %v1091_v13, %v424_v22  ;;  %v808_v19 = vadd.f32 %v807_v32, %v2108_v57 }
 0x2b1   : > { %1148 = vst [vmem:[#allocation2 + $0x48] sm:$0xff] %v1132_v38  ;;  %v915_v27 = vadd.f32 %v914_v6, %v808_v19  ;;  %v431_v19 = vld [vmem:[#allocation2 + $0x78] sm:$0xff] }
 0x2b3   : > { %v1013_v31 = vadd.f32 %v1012_v53, %v915_v27  ;;  %v1028_v12 = vpop.f32.mrf.mxu0  ;;  %v429_v53 = vld [vmem:[#allocation2 + $0x60] sm:$0xff] }
 0x2b5   : > { %v1095_v28 = vadd.f32 %v1094_v55, %v1013_v31 }
 0x2b6   : > { %v812_v29 = vpop.f32.mrf.mxu2  ;;  %v926_v45 = vpop.f32.mrf.mxu3 }
 0x2b7   : > { %v1133_v46 = vadd.f32 %v1095_v28, %v425_v41  ;;  %v813_v48 = vadd.f32 %v812_v29, %v2117_v4 }
 0x2b9   : > { %1149 = vst [vmem:[#allocation2 + $0x40] sm:$0xff] %v1133_v46  ;;  %v921_v52 = vadd.f32 %v920_v34, %v813_v48  ;;  %v432_v48 = vld [vmem:[#allocation2 + $0x28] sm:$0xff] }
 0x2bb   : > { %v1017_v56 = vadd.f32 %v1016_v24, %v921_v52  ;;  %v1032_v50 = vpop.f32.mrf.mxu0 }
 0x2bd   : > { %v1099_v35 = vadd.f32 %v1098_v39, %v1017_v56 }
 0x2be   : > { %v817_v36 = vpop.f32.mrf.mxu2  ;;  %v932_v61 = vpop.f32.mrf.mxu3 }
 0x2bf   : > { %v1134_v57 = vadd.f32 %v1099_v35, %v426_v33  ;;  %v818_v60 = vadd.f32 %v817_v36, %v2124_v16  ;;  %v1110_v16 = vpop.f32.mrf.mxu1 }
 0x2c1   : > { %1150 = vst [vmem:[#allocation2 + $0x20] sm:$0xff] %v1134_v57  ;;  %v927_v63 = vadd.f32 %v926_v45, %v818_v60 }
 0x2c3   : > { %v1021_v3 = vadd.f32 %v1020_v26, %v927_v63  ;;  %v1036_v13 = vpop.f32.mrf.mxu0 }
 0x2c5   : > { %v1103_v8 = vadd.f32 %v1102_v54, %v1021_v3 }
 0x2c6   : > { %v822_v4 = vpop.f32.mrf.mxu2  ;;  %v938_v5 = vpop.f32.mrf.mxu3 }
 0x2c7   : > { %v1135_v9 = vadd.f32 %v1103_v8, %v427_v40  ;;  %v823_v43 = vadd.f32 %v822_v4, %v2131_v30  ;;  %v1114_v0 = vpop.f32.mrf.mxu1 }
 0x2c9   : > { %1151 = vst [vmem:[#allocation2 + $0x10] sm:$0xff] %v1135_v9  ;;  %v933_v49 = vadd.f32 %v932_v61, %v823_v43 }
 0x2cb   : > { %v1025_v10 = vadd.f32 %v1024_v1, %v933_v49  ;;  %v1040_v29 = vpop.f32.mrf.mxu0 }
 0x2cd   : > { %v1107_v20 = vadd.f32 %v1106_v2, %v1025_v10 }
 0x2ce   : > { %v827_v47 = vpop.f32.mrf.mxu2  ;;  %v944_v15 = vpop.f32.mrf.mxu3 }
 0x2cf   : > { %v1136_v23 = vadd.f32 %v1107_v20, %v428_v18  ;;  %v828_v25 = vadd.f32 %v827_v47, %v2140_v37  ;;  %v1118_v34 = vpop.f32.mrf.mxu1 }
 0x2d1   : > { %1152 = vst [vmem:[#allocation2 + $0x38] sm:$0xff] %v1136_v23  ;;  %v939_v14 = vadd.f32 %v938_v5, %v828_v25 }
 0x2d3   : > { %v1029_v58 = vadd.f32 %v1028_v12, %v939_v14 }
 0x2d5   : > { %v1111_v42 = vadd.f32 %v1110_v16, %v1029_v58 }
 0x2d6   : > { %v832_v30 = vpop.f32.mrf.mxu2  ;;  %v950_v17 = vpop.f32.mrf.mxu3 }
 0x2d7   : > { %v1137_v55 = vadd.f32 %v1111_v42, %v429_v53  ;;  %v833_v62 = vadd.f32 %v832_v30, %v2145_v44  ;;  %v1122_v46 = vpop.f32.mrf.mxu1 }
 0x2d9   : > { %1153 = vst [vmem:[#allocation2 + $0x60] sm:$0xff] %v1137_v55  ;;  %v945_v6 = vadd.f32 %v944_v15, %v833_v62 }
 0x2db   : > { %v1033_v7 = vadd.f32 %v1032_v50, %v945_v6 }
 0x2dd   : > { %v1115_v11 = vadd.f32 %v1114_v0, %v1033_v7 }
 0x2de   : > { %v837_v22 = vpop.f32.mrf.mxu2  ;;  %v956_v41 = vpop.f32.mrf.mxu3 }
 0x2df   : > { %v1138_v37 = vadd.f32 %v1115_v11, %v430_v21  ;;  %v838_v24 = vadd.f32 %v837_v22, %v2150_v51 }
 0x2e1   : > { %1154 = vst [vmem:[#allocation2 + $0x70] sm:$0xff] %v1138_v37  ;;  %v951_v32 = vadd.f32 %v950_v17, %v838_v24 }
 0x2e3   : > { %v1037_v38 = vadd.f32 %v1036_v13, %v951_v32 }
 0x2e5   : > { %v1119_v39 = vadd.f32 %v1118_v34, %v1037_v38 }
 0x2e6   : > { %v842_v27 = vpop.f32.mrf.mxu2 }
 0x2e7   : > { %v1139_v44 = vadd.f32 %v1119_v39, %v431_v19  ;;  %v843_v31 = vadd.f32 %v842_v27, %v2153_v59 }
 0x2e9   : > { %1155 = vst [vmem:[#allocation2 + $0x78] sm:$0xff] %v1139_v44  ;;  %v957_v28 = vadd.f32 %v956_v41, %v843_v31 }
 0x2eb   : > { %v1041_v45 = vadd.f32 %v1040_v29, %v957_v28 }
 0x2ed   : > { %v1123_v26 = vadd.f32 %v1122_v46, %v1041_v45 }
 0x2ef   : > { %v1140_v51 = vadd.f32 %v1123_v26, %v432_v48 }
 0x2f1   : > { %1156 = vst [vmem:[#allocation2 + $0x28] sm:$0xff] %v1140_v51 }
 0x2f2 PF: > { %p1167_p7 = scmp.eq.s32.totalorder %s1707_s15, 2 }
 0x2f4   : > { %p1168_p8 = pnand %p1167_p7, %p226_p0 }
 0x2f6   : > { %1171 = sbr.rel (%p1168_p8) target bundleno = 982 (0x3d6), region = 56 }
 0x2fb   : > { %v1204_v52 = vld [vmem:[#allocation3] sm:$0x1]  ;;  %v1172_v59 = vld [vmem:[#allocation2 + $0x30] sm:$0xff]  ;;  %v1174_v36 = vld [vmem:[#allocation2 + $0x58] sm:$0xff]  ;;  %vm1208_vm0 = vcmask 1040384   ;;  %vm1272_vm1 = vcmask 0  }
 0x2fc   : > { %v1205_v54 = vmul.f32 0.05, %v1204_v52  ;;  %v1173_v56 = vld [vmem:[#allocation2] sm:$0xff]  ;;  %v1188_v57 = vmul.f32 0.05, %v1172_v59  ;;  %v1175_v1 = vld [vmem:[#allocation2 + $0x18] sm:$0xff] }
 0x2fd   : > { %v1189_v60 = vmul.f32 0.05, %v1173_v56  ;;  %v1190_v3 = vmul.f32 0.05, %v1174_v36  ;;  %v1176_v40 = vld [vmem:[#allocation2 + $0x50] sm:$0xff]  ;;  %v1177_v43 = vld [vmem:[#allocation2 + $0x68] sm:$0xff] }
 0x2fe   : > { %v1407_v33 = vadd.f32 -1.0, %v1205_v54  ;;  %v1259_v35 = vmul.f32 %v1205_v54, %v1205_v54  ;;  %v1191_v8 = vmul.f32 0.05, %v1175_v1  ;;  %v1219_v4 = vmul.f32 %v1188_v57, %v1188_v57  ;;  %v1178_v10 = vld [vmem:[#allocation2 + $0x8] sm:$0xff]  ;;  %v1180_v14 = vld [vmem:[#allocation2 + $0x40] sm:$0xff]  ;;  %v1182_v62 = vld [vmem:[#allocation2 + $0x10] sm:$0xff] }
 0x2ff   : > { %v1220_v9 = vmul.f32 %v1189_v60, %v1189_v60  ;;  %v1192_v49 = vmul.f32 0.05, %v1176_v40  ;;  %v1221_v5 = vmul.f32 %v1190_v3, %v1190_v3  ;;  %v1193_v12 = vmul.f32 0.05, %v1177_v43  ;;  %v1179_v16 = vld [vmem:[#allocation2 + $0x48] sm:$0xff]  ;;  %v1181_v42 = vld [vmem:[#allocation2 + $0x20] sm:$0xff] }
 0x300   : > { %v1207_v61 = vmul.f32 %v1407_v33, %v1407_v33  ;;  %v1260_v63 = vsel %vm1208_vm0, %v1259_v35, 0.0  ;;  %v1222_v18 = vmul.f32 %v1191_v8, %v1191_v8  ;;  %v1194_v47 = vmul.f32 0.05, %v1178_v10  ;;  %v1183_v21 = vld [vmem:[#allocation2 + $0x38] sm:$0xff]  ;;  %v1184_v37 = vld [vmem:[#allocation2 + $0x60] sm:$0xff]  ;;  %v1185_v34 = vld [vmem:[#allocation2 + $0x70] sm:$0xff] }
 0x301   : > { %1261 = vadd.xlane.f32.xlu1 %v1260_v63  ;;  %v1235_v20 = vadd.f32 %v1220_v9, %v1219_v4  ;;  %v1223_v23 = vmul.f32 %v1192_v49, %v1192_v49  ;;  %v1195_v58 = vmul.f32 0.05, %v1179_v16  ;;  %v1224_v53 = vmul.f32 %v1193_v12, %v1193_v12  ;;  %v1186_v27 = vld [vmem:[#allocation2 + $0x78] sm:$0xff]  ;;  %v1187_v28 = vld [vmem:[#allocation2 + $0x28] sm:$0xff] }
 0x302   : > { %v1209_v2 = vsel %vm1208_vm0, %v1207_v61, 0.0  ;;  %v1196_v50 = vmul.f32 0.05, %v1180_v14  ;;  %v1225_v30 = vmul.f32 %v1194_v47, %v1194_v47  ;;  %v1197_v0 = vmul.f32 0.05, %v1181_v42 }
 0x303   : > { %1210 = vadd.xlane.f32.xlu0 %v1209_v2  ;;  %v1236_v25 = vadd.f32 %v1235_v20, %v1221_v5  ;;  %v1226_v6 = vmul.f32 %v1195_v58, %v1195_v58  ;;  %v1198_v11 = vmul.f32 0.05, %v1182_v62  ;;  %v1199_v24 = vmul.f32 0.05, %v1183_v21 }
 0x304   : > { %v1227_v17 = vmul.f32 %v1196_v50, %v1196_v50  ;;  %v1228_v13 = vmul.f32 %v1197_v0, %v1197_v0  ;;  %v1200_v38 = vmul.f32 0.05, %v1184_v37  ;;  %v1201_v44 = vmul.f32 0.05, %v1185_v34 }
 0x305   : > { %v1237_v15 = vadd.f32 %v1236_v25, %v1222_v18  ;;  %v1229_v19 = vmul.f32 %v1198_v11, %v1198_v11  ;;  %v1230_v31 = vmul.f32 %v1199_v24, %v1199_v24  ;;  %v1202_v29 = vmul.f32 0.05, %v1186_v27 }
 0x306   : > { %v1231_v45 = vmul.f32 %v1200_v38, %v1200_v38  ;;  %v1203_v48 = vmul.f32 0.05, %v1187_v28  ;;  %v1232_v26 = vmul.f32 %v1201_v44, %v1201_v44 }
 0x307   : > { %v1238_v55 = vadd.f32 %v1237_v15, %v1223_v23  ;;  %v1233_v52 = vmul.f32 %v1202_v29, %v1202_v29 }
 0x308   : > { %v1234_v59 = vmul.f32 %v1203_v48, %v1203_v48 }
 0x309   : > { %v1239_v7 = vadd.f32 %v1238_v55, %v1224_v53 }
 0x30b   : > { %v1240_v22 = vadd.f32 %v1239_v7, %v1225_v30 }
 0x30d   : > { %v1241_v32 = vadd.f32 %v1240_v22, %v1226_v6 }
 0x30f   : > { %v1242_v39 = vadd.f32 %v1241_v32, %v1227_v17 }
 0x311   : > { %v1243_v41 = vadd.f32 %v1242_v39, %v1228_v13 }
 0x313   : > { %v1244_v46 = vadd.f32 %v1243_v41, %v1229_v19 }
 0x315   : > { %v1245_v51 = vadd.f32 %v1244_v46, %v1230_v31 }
 0x317   : > { %v1246_v54 = vadd.f32 %v1245_v51, %v1231_v45 }
 0x319   : > { %v1247_v56 = vadd.f32 %v1246_v54, %v1232_v26 }
 0x31b   : > { %v1248_v33 = vadd.f32 %v1247_v56, %v1233_v52 }
 0x31d   : > { %v1249_v35 = vadd.f32 %v1248_v33, %v1234_v59 }
 0x31f   : > { %1250 = vadd.xlane.f32.xlu0 %v1249_v35 }
 0x374   : > { %v1262_v2 = vpop.xlane.xlu1 %1261 }
 0x375   : > { %v1263_v40 = vrot.slane %v1262_v2, 4 }
 0x376   : > { %v1211_v36 = vpop.xlane.xlu0 %1210 }
 0x377   : > { %v1212_v57 = vrot.slane %v1211_v36, 4  ;;  %v1264_v8 = vadd.f32 %v1263_v40, %v1262_v2 }
 0x379   : > { %v1213_v60 = vadd.f32 %v1212_v57, %v1211_v36  ;;  %v1265_v4 = vrot.slane %v1264_v8, 2 }
 0x37b   : > { %v1214_v61 = vrot.slane %v1213_v60, 2  ;;  %v1266_v5 = vadd.f32 %v1265_v4, %v1264_v8 }
 0x37d   : > { %v1215_v63 = vadd.f32 %v1214_v61, %v1213_v60  ;;  %v1267_v18 = vrot.slane %v1266_v5, 1 }
 0x37f   : > { %v1216_v1 = vrot.slane %v1215_v63, 1  ;;  %v1268_v47 = vadd.f32 %v1267_v18, %v1266_v5 }
 0x381   : > { %v1217_v3 = vadd.f32 %v1216_v1, %v1215_v63 }
 0x383   : > { %1416 = vpush %v1217_v3 }
 0x392   : > { %v1251_v9 = vpop.xlane.xlu0 %1250 }
 0x393   : > { %v1252_v43 = vrot.slane %v1251_v9, 4 }
 0x395   : > { %v1253_v49 = vadd.f32 %v1252_v43, %v1251_v9 }
 0x397   : > { %v1254_v10 = vrot.slane %v1253_v49, 2 }
 0x399   : > { %v1255_v12 = vadd.f32 %v1254_v10, %v1253_v49 }
 0x39b   : > { %v1256_v20 = vrot.slane %v1255_v12, 1 }
 0x39d   : > { %v1257_v16 = vadd.f32 %v1256_v20, %v1255_v12 }
 0x39f   : > { %1418 = vpush %v1257_v16 }
 0x3a0   : > { %1420 = vpush %v1268_v47 }
 0x3b4   : > { %s1417_s0 = spop %1416 }
 0x3b5   : > { %v1271_v23 = vstv %s1417_s0 }
 0x3b6   : > { %1273 = vst.msk [vmem:[#allocation13] sm:$0x1] %vm1272_vm1, %v1271_v23 }
 0x3d0   : > { %s1419_s15 = spop %1418 }
 0x3d1   : > { %s1421_s16 = spop %1420 }
 0x3d2   : > { %s1270_s28 = ssub.f32 %s1419_s15, %s1421_s16 }
 0x3d4   : > { %v1274_v25 = vstv %s1270_s28 }
 0x3d5   : > { %1275 = vst.msk [vmem:[#allocation14] sm:$0x1] %vm1272_vm1, %v1274_v25 }
 0x3d6 PF: > { %s2239_s30 = sadd.s32 4294967295, %s1723_s19   ;;  %s1284_s11 = sshll.u32 %s2232_s2, 4  ;;  %s1285_s11 = int_to_ptr.hbm [resolvable:$true] %s1284_s11 }
 0x3d7   : > { %p2184_p9 = scmp.eq.s32.totalorder %s2239_s30, 5  ;;  %s1729_s12 = smov [#allocation13]  }
 0x3d8   : > { %s1282_s23 = sshll.u32 %s1729_s12, 4  ;;  %s1730_s24 = smov [#allocation14]   ;;  %s1283_s23 = int_to_ptr.vmem [resolvable:$true] %s1282_s23 }
 0x3d9   : > { %1427 = dma.vmem_to_hbm [thread:$0]  (%p2184_p9), %s1283_s23, 16, %s1285_s11, [#allocation10]  }
 0x3da   : > { %s1294_s4 = sshll.u32 %s1730_s24, 4  ;;  %s1296_s6 = sshll.u32 %s2233_s3, 4  ;;  %s1295_s4 = int_to_ptr.vmem [resolvable:$true] %s1294_s4  ;;  %s1297_s6 = int_to_ptr.hbm [resolvable:$true] %s1296_s6 }
 0x3db   : > { %1429 = dma.vmem_to_hbm [thread:$0]  (%p2184_p9), %s1295_s4, 16, %s1297_s6, [#allocation15]  }
 0x3dc   : > { %1686 = dma.done.wait (%p2184_p9), [#allocation10], 16  }
 0x3dd   : > { %1688 = vsyncadd (%p2184_p9), [#allocation10], 4294967280 }
 0x3de   : > { %1690 = dma.done.wait (%p2184_p9), [#allocation15], 16  }
 0x3df   : > { %1692 = vsyncadd (%p2184_p9), [#allocation15], 4294967280 }
 0x3e0 PF: > { %s22_s19 = sadd.s32 1, %s1723_s19   ;;  %s2241_s12 = smov %s1699_s13 }
 0x3e1   : > { %p19_p10 = scmp.ge.s32.totalorder %s22_s19, 8   ;;  %s2242_s13 = smov %s1703_s14 }
 0x3e2   : > { %s2243_s14 = smov %s1809_s26  ;;  %s2244_s15 = smov %s1715_s17 }
 0x3e3   : > { %s2245_s16 = smov %s1719_s18  ;;  %s2246_s17 = smov %s2249_s21 }
 0x3e4   : > { %s2247_s18 = smov %s2253_s22  ;;  %21 = sbr.rel (!%p19_p10) target bundleno = 11 (0xb), region = 106 }
 0x3e9   :  { %1315 = vsyncpa [#allocation9], 1 }
 0x3ea   :  { %1317 = vsyncpa [#allocation9 + $0x1], 1 }
 0x3eb   :  { %1318 = vsyncpa [#allocation12], 1 }
 0x3ec   :  { %1320 = vsyncpa [#allocation12 + $0x1], 1 }
 0x3ed   :  { %1321 = vsyncpa [#allocation10], 1 }
 0x3ee   :  { %1323 = vsyncpa [#allocation10 + $0x1], 1 }
 0x3ef   :  { %1324 = vsyncpa [#allocation15], 1 }

</bundles_post_ra>
